<compile_context>
chip_gen: v7x
topology: tpu7x:2x2x1
jax: 0.10.0
libtpu: 0.0.40
codegen_flags: <defaults>
</compile_context>

<pallas_src>
import functools

import jax
import jax.numpy as jnp
from jax.experimental import pallas as pl
from jax.experimental.pallas import tpu as pltpu

NEG_SLOPE = 0.01        # nn.LeakyReLU() default
NUM_CLASSES = 4
OUT_LANES = 128         # lane-dense output slab; real logits live in lanes [0, 4)
L = 2                   # sequence length implied by nn.Linear(512 * 2, 128)


def _leaky_relu(x):
    return jnp.where(x >= 0, x, NEG_SLOPE * x)


def _dot(a, b_ref_val):
    # MXU matmul: bf16 operands, f32 accumulation.
    return jnp.dot(a.astype(jnp.bfloat16), b_ref_val,
                   preferred_element_type=jnp.float32)


def fused_miracle_kernel(x_ref, w1_ref, b1_ref, w2_ref, b2_ref, w3_ref, b3_ref,
                         w4_ref, b4_ref, wf1a_ref, wf1b_ref, bf1_ref,
                         wf2_ref, bf2_ref, out_ref):
    # x_ref: (TB, 2) f32 -- x[:, l] is the (single-channel) input at position l.
    x = x_ref[...]

    def conv_stack(x_col):
        # kernel_size=1 Conv1d == per-position Linear over the channel axis.
        h1 = _leaky_relu(x_col * w1_ref[...] + b1_ref[...])        # (TB,128)  VPU f32
        h2 = _leaky_relu(_dot(h1, w2_ref[...]) + b2_ref[...])      # (TB,128)
        h3 = _leaky_relu(_dot(h2, w3_ref[...]) + b3_ref[...])      # (TB,256)
        h4 = _leaky_relu(_dot(h3, w4_ref[...]) + b4_ref[...])      # (TB,512)
        return h4

    h4_0 = conv_stack(x[:, 0:1])        # position l = 0
    h4_1 = conv_stack(x[:, 1:2])        # position l = 1

    # fc1 over the channel-major flatten (feature f = c*L + l), expressed as two
    # partial matmuls against the per-position row-slices of the fc1 weight.
    z1 = _leaky_relu(_dot(h4_0, wf1a_ref[...])
                     + _dot(h4_1, wf1b_ref[...])
                     + bf1_ref[...])                               # (TB,128)
    # TODO(synk): nn.Dropout(0.5) is identity in eval mode; training-mode mask
    # (pltpu.prng_seed / prng_random_bits) not implemented.

    logits = _dot(z1, wf2_ref[...]) + bf2_ref[...]                 # (TB,128) padded lanes
    lane = jax.lax.broadcasted_iota(jnp.int32, logits.shape, 1)
    logits = jnp.where(lane < NUM_CLASSES, logits, -1e30)          # mask padded lanes

    m = jnp.max(logits, axis=1, keepdims=True)
    e = jnp.exp(logits - m)
    denom = jnp.sum(e, axis=1, keepdims=True)
    out_ref[...] = e * pl.reciprocal(denom, approx=True)           # softmax(dim=1)


def init_params(key):
    """Deterministic synthetic parameters with the module's shapes.

    Weights are stored pre-transposed for right-multiplication:
      conv W_k: (C_in, C_out); biases (1, C).
      fc1 (1024,128) is stored split per conv position: wf1a = W[0::2,:] (l=0),
        wf1b = W[1::2,:] (l=1), so no channel-major transpose is needed at runtime.
      fc2 (128,4) is padded to (128,128) zero columns for lane-dense stores.
    MXU weights are bf16; first-layer (VPU broadcast-mul) weight and all biases f32."""
    ks = jax.random.split(key, 13)
    bf16 = jnp.bfloat16

    def w(k, shape, fan_in, dtype=jnp.float32):
        return (jax.random.normal(k, shape, jnp.float32)
                / jnp.sqrt(fan_in)).astype(dtype)

    params = {
        'w1': w(ks[0], (1, 128), 1.0),      'b1': w(ks[1], (1, 128), 1.0) * 0.1,
        'w2': w(ks[2], (128, 128), 128.0, bf16), 'b2': w(ks[3], (1, 128), 128.0) * 0.1,
        'w3': w(ks[4], (128, 256), 128.0, bf16), 'b3': w(ks[5], (1, 256), 128.0) * 0.1,
        'w4': w(ks[6], (256, 512), 256.0, bf16), 'b4': w(ks[7], (1, 512), 256.0) * 0.1,
        'wf1a': w(ks[8], (512, 128), 1024.0, bf16),
        'wf1b': w(ks[9], (512, 128), 1024.0, bf16),
        'bf1': w(ks[10], (1, 128), 1024.0) * 0.1,
    }
    wf2_core = w(ks[11], (128, NUM_CLASSES), 128.0)
    bf2_core = w(ks[12], (1, NUM_CLASSES), 128.0) * 0.1
    params['wf2'] = jnp.pad(
        wf2_core, ((0, 0), (0, OUT_LANES - NUM_CLASSES))).astype(bf16)
    params['bf2'] = jnp.pad(bf2_core, ((0, 0), (0, OUT_LANES - NUM_CLASSES)))
    return params


def _round_up(n, m):
    return ((n + m - 1) // m) * m


@functools.partial(jax.jit, static_argnames=("block_b",))
def miracle_net_forward(x, params, block_b=512):
    B, c_in, length = x.shape
    assert c_in == 1 and length == L, "MiracleNet expects (B, 1, 2) inputs (fc in = 512*2)"

    # (B, 1, 2) -> (B, 2): one row per batch element, columns are positions.
    xr = x.reshape(B, L)

    # Row-block size: multiple of 8 (sublane tiling), capped at 512 rows so the
    # per-step VMEM footprint (double-buffered) stays small on every generation.
    tb = min(block_b, _round_up(B, 8))
    b_pad = _round_up(B, tb)
    if b_pad != B:
        xr = jnp.pad(xr, ((0, b_pad - B), (0, 0)))

    weights = (params['w1'], params['b1'], params['w2'], params['b2'],
               params['w3'], params['b3'], params['w4'], params['b4'],
               params['wf1a'], params['wf1b'], params['bf1'],
               params['wf2'], params['bf2'])
    # Weights: full-array blocks with a constant index_map -> resident in VMEM
    # across the whole grid (no re-DMA per step).
    w_specs = [pl.BlockSpec(w.shape, lambda i: (0, 0)) for w in weights]

    out = pl.pallas_call(
        fused_miracle_kernel,
        out_shape=jax.ShapeDtypeStruct((b_pad, OUT_LANES), jnp.float32),
        grid=(b_pad // tb,),
        in_specs=[pl.BlockSpec((tb, L), lambda i: (i, 0))] + w_specs,
        out_specs=pl.BlockSpec((tb, OUT_LANES), lambda i: (i, 0)),
        compiler_params=pltpu.CompilerParams(
            dimension_semantics=("parallel",),   # shards rows across v7x's 2 TCs
        ),
    )(xr, *weights)

    # Drop batch padding and the padded (zero-probability) output lanes.
    return out[:B, :NUM_CLASSES]


if __name__ == "__main__":
    key = jax.random.PRNGKey(0)
    k_param, k_x = jax.random.split(key)
    params = init_params(k_param)

    # Small, module-consistent input: batch=2, channels=1, length=2 (NCL).
    x = jax.random.normal(k_x, (2, 1, 2), jnp.float32)

    probs = miracle_net_forward(x, params)
    probs = jax.block_until_ready(probs)

    assert probs.shape == (2, NUM_CLASSES)
    assert bool(jnp.all(jnp.isfinite(probs)))
    assert bool(jnp.all(probs >= 0))
    # Tolerance covers the EUP approx-reciprocal used for the softmax denominator.
    assert bool(jnp.allclose(jnp.sum(probs, axis=1), 1.0, atol=1e-2))
    print("KERNEL_OK")
</pallas_src>

<mosaic_0001>
module attributes {stable_mosaic.version = 11 : i64} {
  func.func @fused_miracle_kernel(%arg0: i32, %arg1: memref<8x2xf32, #tpu.memory_space<vmem>>, %arg2: memref<1x128xf32, #tpu.memory_space<vmem>>, %arg3: memref<1x128xf32, #tpu.memory_space<vmem>>, %arg4: memref<128x128xbf16, #tpu.memory_space<vmem>>, %arg5: memref<1x128xf32, #tpu.memory_space<vmem>>, %arg6: memref<128x256xbf16, #tpu.memory_space<vmem>>, %arg7: memref<1x256xf32, #tpu.memory_space<vmem>>, %arg8: memref<256x512xbf16, #tpu.memory_space<vmem>>, %arg9: memref<1x512xf32, #tpu.memory_space<vmem>>, %arg10: memref<512x128xbf16, #tpu.memory_space<vmem>>, %arg11: memref<512x128xbf16, #tpu.memory_space<vmem>>, %arg12: memref<1x128xf32, #tpu.memory_space<vmem>>, %arg13: memref<128x128xbf16, #tpu.memory_space<vmem>>, %arg14: memref<1x128xf32, #tpu.memory_space<vmem>>, %arg15: memref<8x128xf32, #tpu.memory_space<vmem>>) attributes {dimension_semantics = [#tpu.dimension_semantics<parallel>], iteration_bounds = array<i64: 1>, scalar_prefetch = 0 : i64, scratch_operands = 0 : i64, tpu.core_type = #tpu.core_type<tc>, window_params = [{transform_indices = @transform_0, window_bounds = array<i64: 8, 2>}, {pipeline_mode = #tpu.pipeline_mode<synchronous>, transform_indices = @transform_1, window_bounds = array<i64: 1, 128>}, {pipeline_mode = #tpu.pipeline_mode<synchronous>, transform_indices = @transform_2, window_bounds = array<i64: 1, 128>}, {pipeline_mode = #tpu.pipeline_mode<synchronous>, transform_indices = @transform_3, window_bounds = array<i64: 128, 128>}, {pipeline_mode = #tpu.pipeline_mode<synchronous>, transform_indices = @transform_4, window_bounds = array<i64: 1, 128>}, {pipeline_mode = #tpu.pipeline_mode<synchronous>, transform_indices = @transform_5, window_bounds = array<i64: 128, 256>}, {pipeline_mode = #tpu.pipeline_mode<synchronous>, transform_indices = @transform_6, window_bounds = array<i64: 1, 256>}, {pipeline_mode = #tpu.pipeline_mode<synchronous>, transform_indices = @transform_7, window_bounds = array<i64: 256, 512>}, {pipeline_mode = #tpu.pipeline_mode<synchronous>, transform_indices = @transform_8, window_bounds = array<i64: 1, 512>}, {pipeline_mode = #tpu.pipeline_mode<synchronous>, transform_indices = @transform_9, window_bounds = array<i64: 512, 128>}, {pipeline_mode = #tpu.pipeline_mode<synchronous>, transform_indices = @transform_10, window_bounds = array<i64: 512, 128>}, {pipeline_mode = #tpu.pipeline_mode<synchronous>, transform_indices = @transform_11, window_bounds = array<i64: 1, 128>}, {pipeline_mode = #tpu.pipeline_mode<synchronous>, transform_indices = @transform_12, window_bounds = array<i64: 128, 128>}, {pipeline_mode = #tpu.pipeline_mode<synchronous>, transform_indices = @transform_13, window_bounds = array<i64: 1, 128>}, {transform_indices = @transform_14, window_bounds = array<i64: 8, 128>}]} {
    %c0 = arith.constant 0 : index
    %c0_0 = arith.constant 0 : index
    %0 = vector.load %arg1[%c0, %c0_0] : memref<8x2xf32, #tpu.memory_space<vmem>>, vector<8x2xf32>
    %1 = vector.extract_strided_slice %0 {offsets = [0, 0], sizes = [8, 1], strides = [1, 1]} : vector<8x2xf32> to vector<8x1xf32>
    %c0_1 = arith.constant 0 : index
    %c0_2 = arith.constant 0 : index
    %2 = vector.load %arg2[%c0_1, %c0_2] : memref<1x128xf32, #tpu.memory_space<vmem>>, vector<1x128xf32>
    %3 = vector.broadcast %1 : vector<8x1xf32> to vector<8x128xf32>
    %4 = vector.broadcast %2 : vector<1x128xf32> to vector<8x128xf32>
    %5 = arith.mulf %3, %4 : vector<8x128xf32>
    %c0_3 = arith.constant 0 : index
    %c0_4 = arith.constant 0 : index
    %6 = vector.load %arg3[%c0_3, %c0_4] : memref<1x128xf32, #tpu.memory_space<vmem>>, vector<1x128xf32>
    %7 = vector.broadcast %6 : vector<1x128xf32> to vector<8x128xf32>
    %8 = arith.addf %5, %7 : vector<8x128xf32>
    %cst = arith.constant 0.000000e+00 : f32
    %9 = vector.broadcast %cst : f32 to vector<8x128xf32>
    %10 = arith.cmpf oge, %8, %9 : vector<8x128xf32>
    %cst_5 = arith.constant 0.00999999977 : f32
    %11 = vector.broadcast %cst_5 : f32 to vector<8x128xf32>
    %12 = arith.mulf %11, %8 : vector<8x128xf32>
    %13 = arith.select %10, %8, %12 : vector<8x128xi1>, vector<8x128xf32>
    %c0_6 = arith.constant 0 : index
    %c0_7 = arith.constant 0 : index
    %14 = vector.load %arg4[%c0_6, %c0_7] : memref<128x128xbf16, #tpu.memory_space<vmem>>, vector<128x128xbf16>
    %15 = arith.truncf %13 : vector<8x128xf32> to vector<8x128xbf16>
    %cst_8 = arith.constant dense<0.000000e+00> : vector<8x128xf32>
    %16 = tpu.matmul %15, %14, %cst_8 {dimension_numbers = #tpu.dot_dimension_numbers<[1], [0], [0], [1], [0, 0, 1, 1], [], []>} : vector<8x128xbf16>, vector<128x128xbf16>, vector<8x128xf32> -> vector<8x128xf32>
    %c0_9 = arith.constant 0 : index
    %c0_10 = arith.constant 0 : index
    %17 = vector.load %arg5[%c0_9, %c0_10] : memref<1x128xf32, #tpu.memory_space<vmem>>, vector<1x128xf32>
    %18 = vector.broadcast %17 : vector<1x128xf32> to vector<8x128xf32>
    %19 = arith.addf %16, %18 : vector<8x128xf32>
    %cst_11 = arith.constant 0.000000e+00 : f32
    %20 = vector.broadcast %cst_11 : f32 to vector<8x128xf32>
    %21 = arith.cmpf oge, %19, %20 : vector<8x128xf32>
    %cst_12 = arith.constant 0.00999999977 : f32
    %22 = vector.broadcast %cst_12 : f32 to vector<8x128xf32>
    %23 = arith.mulf %22, %19 : vector<8x128xf32>
    %24 = arith.select %21, %19, %23 : vector<8x128xi1>, vector<8x128xf32>
    %c0_13 = arith.constant 0 : index
    %c0_14 = arith.constant 0 : index
    %25 = vector.load %arg6[%c0_13, %c0_14] : memref<128x256xbf16, #tpu.memory_space<vmem>>, vector<128x256xbf16>
    %26 = arith.truncf %24 : vector<8x128xf32> to vector<8x128xbf16>
    %cst_15 = arith.constant dense<0.000000e+00> : vector<8x256xf32>
    %27 = tpu.matmul %26, %25, %cst_15 {dimension_numbers = #tpu.dot_dimension_numbers<[1], [0], [0], [1], [0, 0, 1, 1], [], []>} : vector<8x128xbf16>, vector<128x256xbf16>, vector<8x256xf32> -> vector<8x256xf32>
    %c0_16 = arith.constant 0 : index
    %c0_17 = arith.constant 0 : index
    %28 = vector.load %arg7[%c0_16, %c0_17] : memref<1x256xf32, #tpu.memory_space<vmem>>, vector<1x256xf32>
    %29 = vector.broadcast %28 : vector<1x256xf32> to vector<8x256xf32>
    %30 = arith.addf %27, %29 : vector<8x256xf32>
    %cst_18 = arith.constant 0.000000e+00 : f32
    %31 = vector.broadcast %cst_18 : f32 to vector<8x256xf32>
    %32 = arith.cmpf oge, %30, %31 : vector<8x256xf32>
    %cst_19 = arith.constant 0.00999999977 : f32
    %33 = vector.broadcast %cst_19 : f32 to vector<8x256xf32>
    %34 = arith.mulf %33, %30 : vector<8x256xf32>
    %35 = arith.select %32, %30, %34 : vector<8x256xi1>, vector<8x256xf32>
    %c0_20 = arith.constant 0 : index
    %c0_21 = arith.constant 0 : index
    %36 = vector.load %arg8[%c0_20, %c0_21] : memref<256x512xbf16, #tpu.memory_space<vmem>>, vector<256x512xbf16>
    %37 = arith.truncf %35 : vector<8x256xf32> to vector<8x256xbf16>
    %cst_22 = arith.constant dense<0.000000e+00> : vector<8x512xf32>
    %38 = tpu.matmul %37, %36, %cst_22 {dimension_numbers = #tpu.dot_dimension_numbers<[1], [0], [0], [1], [0, 0, 1, 1], [], []>} : vector<8x256xbf16>, vector<256x512xbf16>, vector<8x512xf32> -> vector<8x512xf32>
    %c0_23 = arith.constant 0 : index
    %c0_24 = arith.constant 0 : index
    %39 = vector.load %arg9[%c0_23, %c0_24] : memref<1x512xf32, #tpu.memory_space<vmem>>, vector<1x512xf32>
    %40 = vector.broadcast %39 : vector<1x512xf32> to vector<8x512xf32>
    %41 = arith.addf %38, %40 : vector<8x512xf32>
    %cst_25 = arith.constant 0.000000e+00 : f32
    %42 = vector.broadcast %cst_25 : f32 to vector<8x512xf32>
    %43 = arith.cmpf oge, %41, %42 : vector<8x512xf32>
    %cst_26 = arith.constant 0.00999999977 : f32
    %44 = vector.broadcast %cst_26 : f32 to vector<8x512xf32>
    %45 = arith.mulf %44, %41 : vector<8x512xf32>
    %46 = arith.select %43, %41, %45 : vector<8x512xi1>, vector<8x512xf32>
    %47 = vector.extract_strided_slice %0 {offsets = [0, 1], sizes = [8, 1], strides = [1, 1]} : vector<8x2xf32> to vector<8x1xf32>
    %c0_27 = arith.constant 0 : index
    %c0_28 = arith.constant 0 : index
    %48 = vector.load %arg2[%c0_27, %c0_28] : memref<1x128xf32, #tpu.memory_space<vmem>>, vector<1x128xf32>
    %49 = vector.broadcast %47 : vector<8x1xf32> to vector<8x128xf32>
    %50 = vector.broadcast %48 : vector<1x128xf32> to vector<8x128xf32>
    %51 = arith.mulf %49, %50 : vector<8x128xf32>
    %c0_29 = arith.constant 0 : index
    %c0_30 = arith.constant 0 : index
    %52 = vector.load %arg3[%c0_29, %c0_30] : memref<1x128xf32, #tpu.memory_space<vmem>>, vector<1x128xf32>
    %53 = vector.broadcast %52 : vector<1x128xf32> to vector<8x128xf32>
    %54 = arith.addf %51, %53 : vector<8x128xf32>
    %cst_31 = arith.constant 0.000000e+00 : f32
    %55 = vector.broadcast %cst_31 : f32 to vector<8x128xf32>
    %56 = arith.cmpf oge, %54, %55 : vector<8x128xf32>
    %cst_32 = arith.constant 0.00999999977 : f32
    %57 = vector.broadcast %cst_32 : f32 to vector<8x128xf32>
    %58 = arith.mulf %57, %54 : vector<8x128xf32>
    %59 = arith.select %56, %54, %58 : vector<8x128xi1>, vector<8x128xf32>
    %c0_33 = arith.constant 0 : index
    %c0_34 = arith.constant 0 : index
    %60 = vector.load %arg4[%c0_33, %c0_34] : memref<128x128xbf16, #tpu.memory_space<vmem>>, vector<128x128xbf16>
    %61 = arith.truncf %59 : vector<8x128xf32> to vector<8x128xbf16>
    %cst_35 = arith.constant dense<0.000000e+00> : vector<8x128xf32>
    %62 = tpu.matmul %61, %60, %cst_35 {dimension_numbers = #tpu.dot_dimension_numbers<[1], [0], [0], [1], [0, 0, 1, 1], [], []>} : vector<8x128xbf16>, vector<128x128xbf16>, vector<8x128xf32> -> vector<8x128xf32>
    %c0_36 = arith.constant 0 : index
    %c0_37 = arith.constant 0 : index
    %63 = vector.load %arg5[%c0_36, %c0_37] : memref<1x128xf32, #tpu.memory_space<vmem>>, vector<1x128xf32>
    %64 = vector.broadcast %63 : vector<1x128xf32> to vector<8x128xf32>
    %65 = arith.addf %62, %64 : vector<8x128xf32>
    %cst_38 = arith.constant 0.000000e+00 : f32
    %66 = vector.broadcast %cst_38 : f32 to vector<8x128xf32>
    %67 = arith.cmpf oge, %65, %66 : vector<8x128xf32>
    %cst_39 = arith.constant 0.00999999977 : f32
    %68 = vector.broadcast %cst_39 : f32 to vector<8x128xf32>
    %69 = arith.mulf %68, %65 : vector<8x128xf32>
    %70 = arith.select %67, %65, %69 : vector<8x128xi1>, vector<8x128xf32>
    %c0_40 = arith.constant 0 : index
    %c0_41 = arith.constant 0 : index
    %71 = vector.load %arg6[%c0_40, %c0_41] : memref<128x256xbf16, #tpu.memory_space<vmem>>, vector<128x256xbf16>
    %72 = arith.truncf %70 : vector<8x128xf32> to vector<8x128xbf16>
    %cst_42 = arith.constant dense<0.000000e+00> : vector<8x256xf32>
    %73 = tpu.matmul %72, %71, %cst_42 {dimension_numbers = #tpu.dot_dimension_numbers<[1], [0], [0], [1], [0, 0, 1, 1], [], []>} : vector<8x128xbf16>, vector<128x256xbf16>, vector<8x256xf32> -> vector<8x256xf32>
    %c0_43 = arith.constant 0 : index
    %c0_44 = arith.constant 0 : index
    %74 = vector.load %arg7[%c0_43, %c0_44] : memref<1x256xf32, #tpu.memory_space<vmem>>, vector<1x256xf32>
    %75 = vector.broadcast %74 : vector<1x256xf32> to vector<8x256xf32>
    %76 = arith.addf %73, %75 : vector<8x256xf32>
    %cst_45 = arith.constant 0.000000e+00 : f32
    %77 = vector.broadcast %cst_45 : f32 to vector<8x256xf32>
    %78 = arith.cmpf oge, %76, %77 : vector<8x256xf32>
    %cst_46 = arith.constant 0.00999999977 : f32
    %79 = vector.broadcast %cst_46 : f32 to vector<8x256xf32>
    %80 = arith.mulf %79, %76 : vector<8x256xf32>
    %81 = arith.select %78, %76, %80 : vector<8x256xi1>, vector<8x256xf32>
    %c0_47 = arith.constant 0 : index
    %c0_48 = arith.constant 0 : index
    %82 = vector.load %arg8[%c0_47, %c0_48] : memref<256x512xbf16, #tpu.memory_space<vmem>>, vector<256x512xbf16>
    %83 = arith.truncf %81 : vector<8x256xf32> to vector<8x256xbf16>
    %cst_49 = arith.constant dense<0.000000e+00> : vector<8x512xf32>
    %84 = tpu.matmul %83, %82, %cst_49 {dimension_numbers = #tpu.dot_dimension_numbers<[1], [0], [0], [1], [0, 0, 1, 1], [], []>} : vector<8x256xbf16>, vector<256x512xbf16>, vector<8x512xf32> -> vector<8x512xf32>
    %c0_50 = arith.constant 0 : index
    %c0_51 = arith.constant 0 : index
    %85 = vector.load %arg9[%c0_50, %c0_51] : memref<1x512xf32, #tpu.memory_space<vmem>>, vector<1x512xf32>
    %86 = vector.broadcast %85 : vector<1x512xf32> to vector<8x512xf32>
    %87 = arith.addf %84, %86 : vector<8x512xf32>
    %cst_52 = arith.constant 0.000000e+00 : f32
    %88 = vector.broadcast %cst_52 : f32 to vector<8x512xf32>
    %89 = arith.cmpf oge, %87, %88 : vector<8x512xf32>
    %cst_53 = arith.constant 0.00999999977 : f32
    %90 = vector.broadcast %cst_53 : f32 to vector<8x512xf32>
    %91 = arith.mulf %90, %87 : vector<8x512xf32>
    %92 = arith.select %89, %87, %91 : vector<8x512xi1>, vector<8x512xf32>
    %c0_54 = arith.constant 0 : index
    %c0_55 = arith.constant 0 : index
    %93 = vector.load %arg10[%c0_54, %c0_55] : memref<512x128xbf16, #tpu.memory_space<vmem>>, vector<512x128xbf16>
    %94 = arith.truncf %46 : vector<8x512xf32> to vector<8x512xbf16>
    %cst_56 = arith.constant dense<0.000000e+00> : vector<8x128xf32>
    %95 = tpu.matmul %94, %93, %cst_56 {dimension_numbers = #tpu.dot_dimension_numbers<[1], [0], [0], [1], [0, 0, 1, 1], [], []>} : vector<8x512xbf16>, vector<512x128xbf16>, vector<8x128xf32> -> vector<8x128xf32>
    %c0_57 = arith.constant 0 : index
    %c0_58 = arith.constant 0 : index
    %96 = vector.load %arg11[%c0_57, %c0_58] : memref<512x128xbf16, #tpu.memory_space<vmem>>, vector<512x128xbf16>
    %97 = arith.truncf %92 : vector<8x512xf32> to vector<8x512xbf16>
    %cst_59 = arith.constant dense<0.000000e+00> : vector<8x128xf32>
    %98 = tpu.matmul %97, %96, %cst_59 {dimension_numbers = #tpu.dot_dimension_numbers<[1], [0], [0], [1], [0, 0, 1, 1], [], []>} : vector<8x512xbf16>, vector<512x128xbf16>, vector<8x128xf32> -> vector<8x128xf32>
    %99 = arith.addf %95, %98 : vector<8x128xf32>
    %c0_60 = arith.constant 0 : index
    %c0_61 = arith.constant 0 : index
    %100 = vector.load %arg12[%c0_60, %c0_61] : memref<1x128xf32, #tpu.memory_space<vmem>>, vector<1x128xf32>
    %101 = vector.broadcast %100 : vector<1x128xf32> to vector<8x128xf32>
    %102 = arith.addf %99, %101 : vector<8x128xf32>
    %cst_62 = arith.constant 0.000000e+00 : f32
    %103 = vector.broadcast %cst_62 : f32 to vector<8x128xf32>
    %104 = arith.cmpf oge, %102, %103 : vector<8x128xf32>
    %cst_63 = arith.constant 0.00999999977 : f32
    %105 = vector.broadcast %cst_63 : f32 to vector<8x128xf32>
    %106 = arith.mulf %105, %102 : vector<8x128xf32>
    %107 = arith.select %104, %102, %106 : vector<8x128xi1>, vector<8x128xf32>
    %c0_64 = arith.constant 0 : index
    %c0_65 = arith.constant 0 : index
    %108 = vector.load %arg13[%c0_64, %c0_65] : memref<128x128xbf16, #tpu.memory_space<vmem>>, vector<128x128xbf16>
    %109 = arith.truncf %107 : vector<8x128xf32> to vector<8x128xbf16>
    %cst_66 = arith.constant dense<0.000000e+00> : vector<8x128xf32>
    %110 = tpu.matmul %109, %108, %cst_66 {dimension_numbers = #tpu.dot_dimension_numbers<[1], [0], [0], [1], [0, 0, 1, 1], [], []>} : vector<8x128xbf16>, vector<128x128xbf16>, vector<8x128xf32> -> vector<8x128xf32>
    %c0_67 = arith.constant 0 : index
    %c0_68 = arith.constant 0 : index
    %111 = vector.load %arg14[%c0_67, %c0_68] : memref<1x128xf32, #tpu.memory_space<vmem>>, vector<1x128xf32>
    %112 = vector.broadcast %111 : vector<1x128xf32> to vector<8x128xf32>
    %113 = arith.addf %110, %112 : vector<8x128xf32>
    %114 = tpu.iota {dimensions = array<i32: 1>} : vector<8x128xi32>
    %c4_i32 = arith.constant 4 : i32
    %115 = vector.broadcast %c4_i32 : i32 to vector<8x128xi32>
    %116 = arith.cmpi slt, %114, %115 : vector<8x128xi32>
    %cst_69 = arith.constant -1.000000e+30 : f32
    %117 = vector.broadcast %cst_69 : f32 to vector<8x128xf32>
    %118 = arith.select %116, %113, %117 : vector<8x128xi1>, vector<8x128xf32>
    %cst_70 = arith.constant dense<0xFF800000> : vector<8xf32>
    %119 = vector.multi_reduction <maximumf>, %118, %cst_70 [1] : vector<8x128xf32> to vector<8xf32>
    %120 = vector.shape_cast %119 : vector<8xf32> to vector<8x1xf32>
    %121 = vector.broadcast %120 : vector<8x1xf32> to vector<8x128xf32>
    %122 = arith.subf %118, %121 : vector<8x128xf32>
    %123 = math.exp %122 : vector<8x128xf32>
    %cst_71 = arith.constant dense<0.000000e+00> : vector<8xf32>
    %124 = vector.multi_reduction <add>, %123, %cst_71 [1] : vector<8x128xf32> to vector<8xf32>
    %125 = vector.shape_cast %124 : vector<8xf32> to vector<8x1xf32>
    %126 = tpu.reciprocal %125 {approx = true} : vector<8x1xf32> -> vector<8x1xf32>
    %127 = vector.broadcast %126 : vector<8x1xf32> to vector<8x128xf32>
    %128 = arith.mulf %123, %127 : vector<8x128xf32>
    %c0_72 = arith.constant 0 : index
    %c0_73 = arith.constant 0 : index
    %129 = vector.load %arg15[%c0_72, %c0_73] : memref<8x128xf32, #tpu.memory_space<vmem>>, vector<8x128xf32>
    tpu.vector_store %arg15[%c0_72, %c0_73], %128 {strides = array<i32>} : memref<8x128xf32, #tpu.memory_space<vmem>>, vector<8x128xf32>,
    return
  }
  func.func @transform_0(%arg0: i32) -> (i32, i32) {
    %c0_i32 = arith.constant 0 : i32
    %c0_i32_0 = arith.constant 0 : i32
    return %arg0, %c0_i32 : i32, i32
  }
  func.func @transform_1(%arg0: i32) -> (i32, i32) {
    %c0_i32 = arith.constant 0 : i32
    %c0_i32_0 = arith.constant 0 : i32
    %c0_i32_1 = arith.constant 0 : i32
    return %c0_i32, %c0_i32_0 : i32, i32
  }
  func.func @transform_2(%arg0: i32) -> (i32, i32) {
    %c0_i32 = arith.constant 0 : i32
    %c0_i32_0 = arith.constant 0 : i32
    %c0_i32_1 = arith.constant 0 : i32
    return %c0_i32, %c0_i32_0 : i32, i32
  }
  func.func @transform_3(%arg0: i32) -> (i32, i32) {
    %c0_i32 = arith.constant 0 : i32
    %c0_i32_0 = arith.constant 0 : i32
    %c0_i32_1 = arith.constant 0 : i32
    return %c0_i32, %c0_i32_0 : i32, i32
  }
  func.func @transform_4(%arg0: i32) -> (i32, i32) {
    %c0_i32 = arith.constant 0 : i32
    %c0_i32_0 = arith.constant 0 : i32
    %c0_i32_1 = arith.constant 0 : i32
    return %c0_i32, %c0_i32_0 : i32, i32
  }
  func.func @transform_5(%arg0: i32) -> (i32, i32) {
    %c0_i32 = arith.constant 0 : i32
    %c0_i32_0 = arith.constant 0 : i32
    %c0_i32_1 = arith.constant 0 : i32
    return %c0_i32, %c0_i32_0 : i32, i32
  }
  func.func @transform_6(%arg0: i32) -> (i32, i32) {
    %c0_i32 = arith.constant 0 : i32
    %c0_i32_0 = arith.constant 0 : i32
    %c0_i32_1 = arith.constant 0 : i32
    return %c0_i32, %c0_i32_0 : i32, i32
  }
  func.func @transform_7(%arg0: i32) -> (i32, i32) {
    %c0_i32 = arith.constant 0 : i32
    %c0_i32_0 = arith.constant 0 : i32
    %c0_i32_1 = arith.constant 0 : i32
    return %c0_i32, %c0_i32_0 : i32, i32
  }
  func.func @transform_8(%arg0: i32) -> (i32, i32) {
    %c0_i32 = arith.constant 0 : i32
    %c0_i32_0 = arith.constant 0 : i32
    %c0_i32_1 = arith.constant 0 : i32
    return %c0_i32, %c0_i32_0 : i32, i32
  }
  func.func @transform_9(%arg0: i32) -> (i32, i32) {
    %c0_i32 = arith.constant 0 : i32
    %c0_i32_0 = arith.constant 0 : i32
    %c0_i32_1 = arith.constant 0 : i32
    return %c0_i32, %c0_i32_0 : i32, i32
  }
  func.func @transform_10(%arg0: i32) -> (i32, i32) {
    %c0_i32 = arith.constant 0 : i32
    %c0_i32_0 = arith.constant 0 : i32
    %c0_i32_1 = arith.constant 0 : i32
    return %c0_i32, %c0_i32_0 : i32, i32
  }
  func.func @transform_11(%arg0: i32) -> (i32, i32) {
    %c0_i32 = arith.constant 0 : i32
    %c0_i32_0 = arith.constant 0 : i32
    %c0_i32_1 = arith.constant 0 : i32
    return %c0_i32, %c0_i32_0 : i32, i32
  }
  func.func @transform_12(%arg0: i32) -> (i32, i32) {
    %c0_i32 = arith.constant 0 : i32
    %c0_i32_0 = arith.constant 0 : i32
    %c0_i32_1 = arith.constant 0 : i32
    return %c0_i32, %c0_i32_0 : i32, i32
  }
  func.func @transform_13(%arg0: i32) -> (i32, i32) {
    %c0_i32 = arith.constant 0 : i32
    %c0_i32_0 = arith.constant 0 : i32
    %c0_i32_1 = arith.constant 0 : i32
    return %c0_i32, %c0_i32_0 : i32, i32
  }
  func.func @transform_14(%arg0: i32) -> (i32, i32) {
    %c0_i32 = arith.constant 0 : i32
    %c0_i32_0 = arith.constant 0 : i32
    return %arg0, %c0_i32 : i32, i32
  }
}

</mosaic_0001>

<bundles_post_ra>
// kernel: miracle_net_forward.1
= control target key start
LH: loop header
LB: loop body
LE: loop exit
PB: predicated region body
PF: predicated region fallthrough
CT: control target
= control target key end

     0   :  { %19 = vsyncpa [#allocation3], 0  ;;  %s3308_s0 = inlined_call_operand.vmem [shape: f32[8,2], index: 0, kind: input, shape index: {}]   ;;  %s3309_s1 = inlined_call_operand.vmem [shape: f32[1,128], index: 1, kind: input, shape index: {}]   ;;  %s3310_s2 = inlined_call_operand.vmem [shape: f32[1,128], index: 2, kind: input, shape index: {}]   ;;  %s3311_s3 = inlined_call_operand.hbm [shape: bf16[128,128], index: 3, kind: input, shape index: {}]   ;;  %s3312_s4 = inlined_call_operand.vmem [shape: f32[1,128], index: 4, kind: input, shape index: {}]   ;;  %s3313_s5 = inlined_call_operand.hbm [shape: bf16[128,256], index: 5, kind: input, shape index: {}]   ;;  %s3314_s6 = inlined_call_operand.vmem [shape: f32[1,256], index: 6, kind: input, shape index: {}]   ;;  %s3315_s7 = inlined_call_operand.hbm [shape: bf16[256,512], index: 7, kind: input, shape index: {}]   ;;  %s3316_s8 = inlined_call_operand.vmem [shape: f32[1,512], index: 8, kind: input, shape index: {}]   ;;  %s3317_s9 = inlined_call_operand.hbm [shape: bf16[512,128], index: 9, kind: input, shape index: {}]   ;;  %s3318_s10 = inlined_call_operand.hbm [shape: bf16[512,128], index: 10, kind: input, shape index: {}]   ;;  %s3319_s11 = inlined_call_operand.vmem [shape: f32[1,128], index: 11, kind: input, shape index: {}]   ;;  %s3320_s12 = inlined_call_operand.hbm [shape: bf16[128,128], index: 12, kind: input, shape index: {}]   ;;  %s3321_s13 = inlined_call_operand.vmem [shape: f32[1,128], index: 13, kind: input, shape index: {}]   ;;  %s3322_s14 = inlined_call_operand.vmem [shape: f32[8,128], index: 14, kind: output, shape index: {}]  }
   0x1   :  { %20 = vsyncpa [#allocation5], 0 }
   0x2   :  { %21 = vsyncpa [#allocation8], 0 }
   0x3   :  { %22 = vsyncpa [#allocation11], 0  ;;  %s2652_s29 = smov [#allocation4]   ;;  %s2512_s17 = scalar_lea.hbm %s3313_s5, 2048 }
   0x4   :  { %s48_s30 = sshll.u32 %s2652_s29, 4  ;;  %p2513_p0 = scmp.ne.s32.totalorder %s3313_s5, %s2512_s17  ;;  %s49_s30 = int_to_ptr.vmem [resolvable:$true] %s48_s30 }
   0x5   :  { %p2516_p1 = scmp.lt.u32.totalorder %s2512_s17, %s3313_s5 }
   0x7   :  { %p2518_p2 = pnand %p2516_p1, %p2513_p0 }
   0x9   :  { %2521 = shalt.err (!%p2518_p2)
}
   0xa   :  { %s2522_s22 = scalar_lea.vmem %s49_s30, 2048  ;;  %p2527_p4 = scmp.lt.s32.totalorder %s49_s30, %s49_s30 }
   0xb   :  { %p2523_p3 = scmp.ne.s32.totalorder %s49_s30, %s2522_s22  ;;  %p2528_p5 = scmp.lt.s32.totalorder %s2522_s22, %s2522_s22 }
   0xd   :  { %p2529_p6 = por %p2528_p5, %p2527_p4 }
   0xf   :  { %p2530_p7 = pnand %p2529_p6, %p2523_p3 }
  0x11   :  { %2533 = shalt.err (!%p2530_p7)
}
  0x12   :  { %s2653_s23 = smov 128   ;;  %s2654_s24 = smov 8  }
  0x13   :  { %54 = dma.hbm_to_vmem [thread:$0]  %s3313_s5, 2048, %s49_s30, [#allocation5], %s2653_s23, %s2653_s23, %s2654_s24  }
  0x14   :  { %s2655_s27 = smov [#allocation7]   ;;  %s2656_s29 = smov [#allocation2]  }
  0x15   :  { %s76_s28 = sshll.u32 %s2655_s27, 4  ;;  %s34_s15 = sshll.u32 %s2656_s29, 4  ;;  %s77_s28 = int_to_ptr.vmem [resolvable:$true] %s76_s28  ;;  %s35_s15 = int_to_ptr.vmem [resolvable:$true] %s34_s15 }
  0x16   :  { %s2534_s18 = scalar_lea.hbm %s3317_s9, 4096 }
  0x17   :  { %p2535_p8 = scmp.ne.s32.totalorder %s3317_s9, %s2534_s18  ;;  %p2538_p9 = scmp.lt.u32.totalorder %s2534_s18, %s3317_s9 }
  0x19   :  { %p2540_p10 = pnand %p2538_p9, %p2535_p8 }
  0x1b   :  { %2543 = shalt.err (!%p2540_p10)
}
  0x1c   :  { %s2544_s5 = scalar_lea.vmem %s77_s28, 4096  ;;  %p2549_p12 = scmp.lt.s32.totalorder %s77_s28, %s77_s28 }
  0x1d   :  { %p2545_p11 = scmp.ne.s32.totalorder %s77_s28, %s2544_s5  ;;  %p2550_p13 = scmp.lt.s32.totalorder %s2544_s5, %s2544_s5 }
  0x1f   :  { %p2551_p0 = por %p2550_p13, %p2549_p12 }
  0x21   :  { %p2552_p1 = pnand %p2551_p0, %p2545_p11 }
  0x23   :  { %2555 = shalt.err (!%p2552_p1)
}
  0x24   :  { %s2657_s30 = smov 64   ;;  %s2658_s23 = smov 4  }
  0x25   :  { %82 = dma.hbm_to_vmem [thread:$0]  %s3317_s9, 4096, %s77_s28, [#allocation8], %s2657_s30, %s2657_s30, %s2658_s23  }
  0x26   :  { %s2556_s29 = scalar_lea.hbm %s3311_s3, 1024 }
  0x27   :  { %p2557_p2 = scmp.ne.s32.totalorder %s3311_s3, %s2556_s29  ;;  %p2560_p3 = scmp.lt.u32.totalorder %s2556_s29, %s3311_s3 }
  0x29   :  { %p2562_p4 = pnand %p2560_p3, %p2557_p2 }
  0x2b   :  { %2565 = shalt.err (!%p2562_p4)
}
  0x2c   :  { %s2566_s20 = scalar_lea.vmem %s35_s15, 1024  ;;  %p2571_p6 = scmp.lt.s32.totalorder %s35_s15, %s35_s15 }
  0x2d   :  { %p2567_p5 = scmp.ne.s32.totalorder %s35_s15, %s2566_s20  ;;  %p2572_p7 = scmp.lt.s32.totalorder %s2566_s20, %s2566_s20 }
  0x2f   :  { %p2573_p8 = por %p2572_p7, %p2571_p6 }
  0x31   :  { %p2574_p9 = pnand %p2573_p8, %p2567_p5 }
  0x33   :  { %2577 = shalt.err (!%p2574_p9)
}
  0x34   :  { %40 = dma.hbm_to_vmem [thread:$0]  %s3311_s3, 1024, %s35_s15, [#allocation3], %s2657_s30, %s2657_s30, %s2658_s23  }
  0x35   :  { %s2659_s21 = smov [#allocation6]   ;;  %s2578_s25 = scalar_lea.hbm %s3315_s7, 8192 }
  0x36   :  { %s62_s22 = sshll.u32 %s2659_s21, 4  ;;  %p2579_p10 = scmp.ne.s32.totalorder %s3315_s7, %s2578_s25  ;;  %s63_s22 = int_to_ptr.vmem [resolvable:$true] %s62_s22 }
  0x37   :  { %p2582_p11 = scmp.lt.u32.totalorder %s2578_s25, %s3315_s7 }
  0x39   :  { %p2584_p12 = pnand %p2582_p11, %p2579_p10 }
  0x3b   :  { %2587 = shalt.err (!%p2584_p12)
}
  0x3c   :  { %s2588_s17 = scalar_lea.vmem %s63_s22, 8192  ;;  %p2593_p0 = scmp.lt.s32.totalorder %s63_s22, %s63_s22 }
  0x3d   :  { %p2589_p13 = scmp.ne.s32.totalorder %s63_s22, %s2588_s17  ;;  %p2594_p1 = scmp.lt.s32.totalorder %s2588_s17, %s2588_s17 }
  0x3f   :  { %p2595_p2 = por %p2594_p1, %p2593_p0 }
  0x41   :  { %p2596_p3 = pnand %p2595_p2, %p2589_p13 }
  0x43   :  { %2599 = shalt.err (!%p2596_p3)
}
  0x44   :  { %s2660_s3 = smov 256   ;;  %s2661_s15 = smov 16  }
  0x45   :  { %68 = dma.hbm_to_vmem [thread:$0]  %s3315_s7, 8192, %s63_s22, [#allocation5], %s2660_s3, %s2660_s3, %s2661_s15  }
  0x46   :  { %s2662_s20 = smov [#allocation9]   ;;  %s2663_s28 = smov [#allocation10]  }
  0x47   :  { %s88_s9 = sshll.u32 %s2662_s20, 4  ;;  %s102_s21 = sshll.u32 %s2663_s28, 4  ;;  %s89_s9 = int_to_ptr.vmem [resolvable:$true] %s88_s9  ;;  %s2797_s21 = int_to_ptr.vmem [resolvable:$true] %s102_s21 }
  0x48   :  { %s2600_s25 = scalar_lea.hbm %s3318_s10, 4096 }
  0x49   :  { %p2601_p4 = scmp.ne.s32.totalorder %s3318_s10, %s2600_s25  ;;  %p2604_p5 = scmp.lt.u32.totalorder %s2600_s25, %s3318_s10 }
  0x4b   :  { %p2606_p6 = pnand %p2604_p5, %p2601_p4 }
  0x4d   :  { %2609 = shalt.err (!%p2606_p6)
}
  0x4e   :  { %s2610_s7 = scalar_lea.vmem %s89_s9, 4096  ;;  %p2615_p8 = scmp.lt.s32.totalorder %s89_s9, %s89_s9 }
  0x4f   :  { %p2611_p7 = scmp.ne.s32.totalorder %s89_s9, %s2610_s7  ;;  %p2616_p9 = scmp.lt.s32.totalorder %s2610_s7, %s2610_s7 }
  0x51   :  { %p2617_p10 = por %p2616_p9, %p2615_p8 }
  0x53   :  { %p2618_p11 = pnand %p2617_p10, %p2611_p7 }
  0x55   :  { %2621 = shalt.err (!%p2618_p11)
}
  0x56   :  { %94 = dma.hbm_to_vmem [thread:$0]  %s3318_s10, 4096, %s89_s9, [#allocation8], %s2657_s30, %s2657_s30, %s2658_s23  }
  0x57   :  { %s2622_s18 = scalar_lea.hbm %s3320_s12, 1024 }
  0x58   :  { %p2623_p12 = scmp.ne.s32.totalorder %s3320_s12, %s2622_s18  ;;  %p2626_p13 = scmp.lt.u32.totalorder %s2622_s18, %s3320_s12 }
  0x5a   :  { %p2628_p0 = pnand %p2626_p13, %p2623_p12 }
  0x5c   :  { %2631 = shalt.err (!%p2628_p0)
}
  0x5d   :  { %s2632_s24 = scalar_lea.vmem %s2797_s21, 1024  ;;  %p2637_p2 = scmp.lt.s32.totalorder %s2797_s21, %s2797_s21 }
  0x5e   :  { %p2633_p1 = scmp.ne.s32.totalorder %s2797_s21, %s2632_s24  ;;  %p2638_p3 = scmp.lt.s32.totalorder %s2632_s24, %s2632_s24 }
  0x60   :  { %p2639_p4 = por %p2638_p3, %p2637_p2 }
  0x62   :  { %p2640_p5 = pnand %p2639_p4, %p2633_p1 }
  0x64   :  { %2643 = shalt.err (!%p2640_p5)
}
  0x65   :  { %108 = dma.hbm_to_vmem [thread:$0]  %s3320_s12, 1024, %s2797_s21, [#allocation11], %s2657_s30, %s2657_s30, %s2658_s23  }
  0x66   :  { %2644 = dma.done.wait [#allocation3], 1024  }
  0x67   :  { %2645 = vsyncadd [#allocation3], 4294966272 }
  0x68   :  { %2646 = dma.done.wait [#allocation5], 10240  }
  0x69   :  { %2647 = vsyncadd [#allocation5], 4294957056 }
  0x6a   :  { %2648 = dma.done.wait [#allocation8], 8192  }
  0x6b   :  { %2649 = vsyncadd [#allocation8], 4294959104 }
  0x6c   :  { %2650 = dma.done.wait [#allocation11], 1024  }
  0x6d   :  { %2651 = vsyncadd [#allocation11], 4294966272  ;;  %v3323_v0 = vmov 0   ;;  %v3324_v1 = vmov 0.0   ;;  %v2840_v2 = vld [vmem:[%s3308_s0] sm:$0xff]  ;;  %v2846_v4 = vld [vmem:[#allocation2 + $0x8] sm:$0xff]  }
  0x6e   :  { %2306 = vset.pattern.permute.xlu0 %v3323_v0  ;;  %2230 = vmatprep.subr.bf16.mxu0 %v3324_v1  ;;  %v2843_v3 = vld [vmem:[#allocation2] sm:$0xff]   ;;  %vm2666_vm0 = vmmov 0   ;;  %v2852_v5 = vld [vmem:[#allocation2 + $0x10] sm:$0xff]   ;;  %v2860_v8 = vld [vmem:[#allocation2 + $0x18] sm:$0xff]   ;;  %v2667_v37 = vmov 1  }
  0x6f   :  { %411 = vmatprep.mubr.bf16.mxu1 %v3323_v0  ;;  %134 = vperm.xlu0 %2306, %v2840_v2   ;;  %v2855_v6 = vld [vmem:[#allocation4 + $0x4] ss:$8 sps:$4 sm:$0xff]   ;;  %v2857_v7 = vld [vmem:[#allocation4] ss:$8 sps:$4 sm:$0xff]   ;;  %v2862_v9 = vld [vmem:[#allocation4 + $0x14] ss:$8 sps:$4 sm:$0xff]  }
  0x70   :  { %2231 = vmatpush3.bf16.msra.mxu0 %v2843_v3  ;;  %2246 = vmatprep.mubr.msk.bf16.mxu0 %vm2666_vm0, %v3324_v1  ;;  %v2867_v10 = vld [vmem:[#allocation4 + $0x10] ss:$8 sps:$4 sm:$0xff]   ;;  %v2870_v11 = vld [vmem:[#allocation4 + $0x24] ss:$8 sps:$4 sm:$0xff]   ;;  %v2876_v13 = vld [vmem:[#allocation4 + $0x20] ss:$8 sps:$4 sm:$0xff]  }
  0x71   :  { %2232 = vmatprep.subr.bf16.mxu0 %v3324_v1  ;;  %379 = vmatprep.subr.bf16.mxu1 %v2855_v6  ;;  %v2873_v12 = vld [vmem:[#allocation2 + $0x20] sm:$0xff]   ;;  %v2878_v14 = vld [vmem:[#allocation2 + $0x28] sm:$0xff]   ;;  %v2881_v15 = vld [vmem:[#allocation4 + $0x34] ss:$8 sps:$4 sm:$0xff]  }
  0x72   :  { %380 = vmatpush1.bf16.msra.mxu1 %v2857_v7  ;;  %v2885_v16 = vld [vmem:[#allocation4 + $0x30] ss:$8 sps:$4 sm:$0xff]   ;;  %v2888_v17 = vld [vmem:[#allocation4 + $0x44] ss:$8 sps:$4 sm:$0xff]   ;;  %v2895_v19 = vld [vmem:[#allocation4 + $0x40] ss:$8 sps:$4 sm:$0xff]  }
  0x73   :  { %381 = vmatprep.subr.bf16.mxu1 %v2862_v9  ;;  %v2890_v18 = vld [vmem:[#allocation2 + $0x30] sm:$0xff]   ;;  %v2900_v21 = vld [vmem:[#allocation2 + $0x38] sm:$0xff]   ;;  %v2915_v23 = vld [vmem:[%s3309_s1] ss:$0 sm:$0xff]  ;;  %2307 = vset.pattern.permute.xlu0 %v2667_v37 }
  0x74   :  { %2233 = vmatpush3.bf16.msra.mxu0 %v2846_v4  ;;  %v2898_v20 = vld [vmem:[#allocation4 + $0x54] ss:$8 sps:$4 sm:$0xff]   ;;  %v2905_v22 = vld [vmem:[#allocation4 + $0x50] ss:$8 sps:$4 sm:$0xff]   ;;  %v2920_v24 = vld [vmem:[%s3310_s2] ss:$0 sm:$0xff]  ;;  %929 = vperm.xlu0 %2307, %v2840_v2  }
  0x75   :  { %2234 = vmatprep.subr.bf16.mxu0 %v3324_v1  ;;  %v2924_v31 = vld [vmem:[#allocation4 + $0x64] ss:$8 sps:$4 sm:$0xff]   ;;  %v2926_v32 = vld [vmem:[#allocation4 + $0x60] ss:$8 sps:$4 sm:$0xff]   ;;  %v2930_v33 = vld [vmem:[#allocation4 + $0x74] ss:$8 sps:$4 sm:$0xff]  }
  0x76   :  { %382 = vmatpush1.bf16.msra.mxu1 %v2867_v10  ;;  %v2932_v34 = vld [vmem:[#allocation4 + $0x70] ss:$8 sps:$4 sm:$0xff]   ;;  %v2938_v36 = vld [vmem:[#allocation6 + $0x4] ss:$16 sps:$4 sm:$0xff]   ;;  %v2940_v38 = vld [vmem:[#allocation6 + $0xc] ss:$16 sps:$4 sm:$0xff]  }
  0x77   :  { %383 = vmatprep.subr.bf16.mxu1 %v2870_v11  ;;  %v2936_v35 = vld [vmem:[#allocation6] ss:$16 sps:$4 sm:$0xff]   ;;  %v2944_v39 = vld [vmem:[#allocation6 + $0x24] ss:$16 sps:$4 sm:$0xff]  }
  0x78   :  { %2235 = vmatpush3.bf16.msra.mxu0 %v2852_v5  ;;  %v2948_v40 = vld [vmem:[#allocation6 + $0x20] ss:$16 sps:$4 sm:$0xff]   ;;  %v2951_v41 = vld [vmem:[#allocation6 + $0x44] ss:$16 sps:$4 sm:$0xff]  }
  0x79   :  { %2236 = vmatprep.subr.bf16.mxu0 %v3324_v1  ;;  %v2954_v42 = vld [vmem:[#allocation6 + $0x40] ss:$16 sps:$4 sm:$0xff]   ;;  %v2957_v43 = vld [vmem:[#allocation6 + $0x64] ss:$16 sps:$4 sm:$0xff]  }
  0x7a   :  { %384 = vmatpush1.bf16.msra.mxu1 %v2876_v13  ;;  %v2960_v44 = vld [vmem:[#allocation6 + $0x60] ss:$16 sps:$4 sm:$0xff]   ;;  %v2963_v45 = vld [vmem:[#allocation6 + $0x84] ss:$16 sps:$4 sm:$0xff]  }
  0x7b   :  { %385 = vmatprep.subr.bf16.mxu1 %v2881_v15  ;;  %v2966_v46 = vld [vmem:[#allocation6 + $0x80] ss:$16 sps:$4 sm:$0xff]   ;;  %v2969_v47 = vld [vmem:[#allocation6 + $0xa4] ss:$16 sps:$4 sm:$0xff]  }
  0x7c   :  { %2237 = vmatpush3.bf16.msra.mxu0 %v2860_v8  ;;  %v2972_v48 = vld [vmem:[#allocation6 + $0xa0] ss:$16 sps:$4 sm:$0xff]   ;;  %v2975_v49 = vld [vmem:[#allocation6 + $0xc4] ss:$16 sps:$4 sm:$0xff]  }
  0x7d   :  { %2238 = vmatprep.subr.bf16.mxu0 %v3324_v1  ;;  %v2978_v50 = vld [vmem:[#allocation6 + $0xc0] ss:$16 sps:$4 sm:$0xff]   ;;  %v2981_v51 = vld [vmem:[#allocation6 + $0xe4] ss:$16 sps:$4 sm:$0xff]  }
  0x7e   :  { %386 = vmatpush1.bf16.msra.mxu1 %v2885_v16  ;;  %v2984_v52 = vld [vmem:[#allocation6 + $0xe0] ss:$16 sps:$4 sm:$0xff]   ;;  %v2987_v53 = vld [vmem:[#allocation6 + $0x104] ss:$16 sps:$4 sm:$0xff]  }
  0x7f   :  { %387 = vmatprep.subr.bf16.mxu1 %v2888_v17  ;;  %v2990_v54 = vld [vmem:[#allocation6 + $0x100] ss:$16 sps:$4 sm:$0xff]   ;;  %v2993_v55 = vld [vmem:[#allocation6 + $0x124] ss:$16 sps:$4 sm:$0xff]  }
  0x80   :  { %2239 = vmatpush3.bf16.msra.mxu0 %v2873_v12  ;;  %v2996_v56 = vld [vmem:[#allocation6 + $0x120] ss:$16 sps:$4 sm:$0xff]   ;;  %v2999_v57 = vld [vmem:[#allocation6 + $0x144] ss:$16 sps:$4 sm:$0xff]  }
  0x81   :  { %2240 = vmatprep.subr.bf16.mxu0 %v3324_v1  ;;  %3372 = vst [vmem:[#allocation16_spill] sm:$0xff] %v2999_v57  ;;  %v3002_v58 = vld [vmem:[#allocation6 + $0x140] ss:$16 sps:$4 sm:$0xff]   ;;  %v3005_v59 = vld [vmem:[#allocation6 + $0x164] ss:$16 sps:$4 sm:$0xff]  }
  0x82   :  { %388 = vmatpush1.bf16.msra.mxu1 %v2895_v19  ;;  %3373 = vst [vmem:[#allocation17_spill] sm:$0xff] %v3002_v58  ;;  %3374 = vst [vmem:[#allocation18_spill] sm:$0xff] %v3005_v59  ;;  %v3008_v60 = vld [vmem:[#allocation6 + $0x160] ss:$16 sps:$4 sm:$0xff]   ;;  %v3011_v61 = vld [vmem:[#allocation6 + $0x184] ss:$16 sps:$4 sm:$0xff]  }
  0x83   :  { %389 = vmatprep.subr.bf16.mxu1 %v2898_v20  ;;  %3375 = vst [vmem:[#allocation19_spill] sm:$0xff] %v3008_v60  ;;  %3376 = vst [vmem:[#allocation20_spill] sm:$0xff] %v3011_v61  ;;  %v3014_v62 = vld [vmem:[#allocation6 + $0x180] ss:$16 sps:$4 sm:$0xff]   ;;  %v3017_v63 = vld [vmem:[#allocation6 + $0x1a4] ss:$16 sps:$4 sm:$0xff]  }
  0x84   :  { %2241 = vmatpush3.bf16.msra.mxu0 %v2878_v14  ;;  %3377 = vst [vmem:[#allocation21_spill] sm:$0xff] %v3014_v62  ;;  %3378 = vst [vmem:[#allocation22_spill] sm:$0xff] %v3017_v63  ;;  %v3020_v2 = vld [vmem:[#allocation6 + $0x1a0] ss:$16 sps:$4 sm:$0xff]  }
  0x85   :  { %2242 = vmatprep.subr.bf16.mxu0 %v3324_v1  ;;  %3379 = vst [vmem:[#allocation23_spill] sm:$0xff] %v3020_v2 }
  0x86   :  { %390 = vmatpush1.bf16.msra.mxu1 %v2905_v22 }
  0x87   :  { %391 = vmatprep.subr.bf16.mxu1 %v2924_v31 }
  0x88   :  { %2243 = vmatpush3.bf16.msra.mxu0 %v2890_v18 }
  0x89   :  { %2244 = vmatprep.subr.bf16.mxu0 %v3324_v1  ;;  %v3030_v1 = vld [vmem:[#allocation6 + $0x8] ss:$16 sps:$4 sm:$0xff]  }
  0x8a   :  { %392 = vmatpush1.bf16.msra.mxu1 %v2926_v32  ;;  %3381 = vst [vmem:[#allocation25_spill] sm:$0xff] %v3030_v1 }
  0x8b   :  { %393 = vmatprep.subr.bf16.mxu1 %v2930_v33 }
  0x8c   :  { %2245 = vmatpush3.bf16.msra.mxu0 %v2900_v21 }
  0x8d   :  { %834 = vmatprep.subr.bf16.mxu0 %v2938_v36 }
  0x8e   :  { %394 = vmatpush1.bf16.msra.mxu1 %v2932_v34 }
  0x8f   :  { %875 = vmatprep.subr.bf16.mxu1 %v2940_v38 }
  0xee   :  { %v135_v25 = vpop.permute.xlu0 %134 }
  0xef   :  { %v143_v26 = vmul.f32 %v2915_v23, %v135_v25  ;;  %v3027_v25 = vld [vmem:[%s3312_s4] ss:$0 sm:$0xff] }
  0xf0   :  { %3380 = vst [vmem:[#allocation24_spill] sm:$0xff] %v3027_v25 }
  0xf1   :  { %v151_v27 = vadd.f32 %v2920_v24, %v143_v26 }
  0xf3   :  { %v153_v28 = vmul.f32 0.01, %v151_v27  ;;  %vm152_vm1 = vcmp.ge.f32.partialorder %v151_v27, 0.0 }
  0xf5   :  { %v154_v29 = vsel %vm152_vm1, %v151_v27, %v153_v28 }
  0xf6   :  { %v171_v30 = vpack.c.bf16 %v154_v29, %v154_v29 }
  0xf8   :  { %2247 = vmatmul.mubr.bf16.vlgmr.msra.gmra.mrb[0].mxu0 %v171_v30 }
  0xf9   :  { %835 = vmatpush1.bf16.msra.mxu0 %v2936_v35 }
  0xfa   :  { %836 = vmatprep.subr.bf16.mxu0 %v2944_v39 }
  0xfd   :  { %837 = vmatpush1.bf16.msra.mxu0 %v2948_v40 }
  0xfe   :  { %838 = vmatprep.subr.bf16.mxu0 %v2951_v41 }
 0x101   :  { %839 = vmatpush1.bf16.msra.mxu0 %v2954_v42 }
 0x102   :  { %840 = vmatprep.subr.bf16.mxu0 %v2957_v43 }
 0x105   :  { %841 = vmatpush1.bf16.msra.mxu0 %v2960_v44 }
 0x106   :  { %842 = vmatprep.subr.bf16.mxu0 %v2963_v45 }
 0x109   :  { %843 = vmatpush1.bf16.msra.mxu0 %v2966_v46 }
 0x10a   :  { %844 = vmatprep.subr.bf16.mxu0 %v2969_v47 }
 0x10d   :  { %845 = vmatpush1.bf16.msra.mxu0 %v2972_v48 }
 0x10e   :  { %846 = vmatprep.subr.bf16.mxu0 %v2975_v49 }
 0x111   :  { %847 = vmatpush1.bf16.msra.mxu0 %v2978_v50 }
 0x112   :  { %848 = vmatprep.subr.bf16.mxu0 %v2981_v51 }
 0x115   :  { %849 = vmatpush1.bf16.msra.mxu0 %v2984_v52 }
 0x116   :  { %850 = vmatprep.subr.bf16.mxu0 %v2987_v53 }
 0x119   :  { %851 = vmatpush1.bf16.msra.mxu0 %v2990_v54 }
 0x11a   :  { %852 = vmatprep.subr.bf16.mxu0 %v2993_v55 }
 0x11d   :  { %853 = vmatpush1.bf16.msra.mxu0 %v2996_v56 }
 0x11e   :  { %854 = vmatprep.subr.bf16.mxu0 %v2999_v57 }
 0x121   :  { %855 = vmatpush1.bf16.msra.mxu0 %v3002_v58 }
 0x122   :  { %856 = vmatprep.subr.bf16.mxu0 %v3005_v59 }
 0x125   :  { %857 = vmatpush1.bf16.msra.mxu0 %v3008_v60 }
 0x126   :  { %858 = vmatprep.subr.bf16.mxu0 %v3011_v61  ;;  %v3038_v61 = vld [vmem:[#allocation6 + $0x4c] ss:$16 sps:$4 sm:$0xff]  }
 0x127   :  { %3384 = vst [vmem:[#allocation28_spill] sm:$0xff] %v3038_v61 }
 0x129   :  { %859 = vmatpush1.bf16.msra.mxu0 %v3014_v62 }
 0x12a   :  { %860 = vmatprep.subr.bf16.mxu0 %v3017_v63  ;;  %v3032_v63 = vld [vmem:[#allocation6 + $0x2c] ss:$16 sps:$4 sm:$0xff]  }
 0x12b   :  { %3382 = vst [vmem:[#allocation26_spill] sm:$0xff] %v3032_v63 }
 0x12d   :  { %861 = vmatpush1.bf16.msra.mxu0 %v3020_v2  ;;  %v3035_v2 = vld [vmem:[#allocation6 + $0x28] ss:$16 sps:$4 sm:$0xff]  }
 0x12e   :  { %3383 = vst [vmem:[#allocation27_spill] sm:$0xff] %v3035_v2 }
 0x1cb   :  { %v261_v26 = vpop.f32.mrb[0].mxu0 }
 0x1cc   :  { %v262_v27 = vadd.f32 %v3027_v25, %v261_v26  ;;  %v2248_v28 = vpop.f32.mrb[1].mxu0  ;;  %v3041_v26 = vld [vmem:[#allocation6 + $0x48] ss:$16 sps:$4 sm:$0xff]  }
 0x1cd   :  { %v264_v29 = vpop.f32.mrb[2].mxu0  ;;  %3385 = vst [vmem:[#allocation29_spill] sm:$0xff] %v3041_v26  ;;  %v3053_v28 = vld [vmem:[#allocation6 + $0x88] ss:$16 sps:$4 sm:$0xff]  }
 0x1ce   :  { %vm267_vm2 = vcmp.ge.f32.partialorder %v262_v27, 0.0  ;;  %v268_v30 = vmul.f32 0.01, %v262_v27  ;;  %v2249_v37 = vpop.f32.mrb[3].mxu0  ;;  %3389 = vst [vmem:[#allocation33_spill] sm:$0xff] %v3053_v28 }
 0x1cf   :  { %v3056_v29 = vld [vmem:[#allocation6 + $0xac] ss:$16 sps:$4 sm:$0xff]  }
 0x1d0   :  { %v269_v0 = vsel %vm267_vm2, %v262_v27, %v268_v30  ;;  %v3044_v27 = vld [vmem:[#allocation6 + $0x6c] ss:$16 sps:$4 sm:$0xff]   ;;  %3390 = vst [vmem:[#allocation34_spill] sm:$0xff] %v3056_v29  ;;  %v3059_v30 = vld [vmem:[#allocation6 + $0xa8] ss:$16 sps:$4 sm:$0xff]  }
 0x1d1   :  { %v286_v62 = vpack.c.bf16 %v269_v0, %v269_v0  ;;  %3386 = vst [vmem:[#allocation30_spill] sm:$0xff] %v3044_v27  ;;  %v3047_v0 = vld [vmem:[#allocation6 + $0x68] ss:$16 sps:$4 sm:$0xff]   ;;  %3391 = vst [vmem:[#allocation35_spill] sm:$0xff] %v3059_v30  ;;  %v3062_v37 = vld [vmem:[#allocation6 + $0xcc] ss:$16 sps:$4 sm:$0xff]  }
 0x1d2   :  { %3387 = vst [vmem:[#allocation31_spill] sm:$0xff] %v3047_v0  ;;  %3392 = vst [vmem:[#allocation36_spill] sm:$0xff] %v3062_v37 }
 0x1d3   :  { %412 = vmatmul.mubr.bf16.vlgmr.msra.gmra.mrb[0].mxu1 %v286_v62  ;;  %v3050_v62 = vld [vmem:[#allocation6 + $0x8c] ss:$16 sps:$4 sm:$0xff]  }
 0x1d4   :  { %876 = vmatpush1.bf16.msra.mxu1 %v3030_v1  ;;  %3388 = vst [vmem:[#allocation32_spill] sm:$0xff] %v3050_v62 }
 0x1d5   :  { %877 = vmatprep.subr.bf16.mxu1 %v3032_v63  ;;  %v287_v63 = vld [vmem:[%s3314_s6] sm:$0x3] }
 0x1d8   :  { %878 = vmatpush1.bf16.msra.mxu1 %v3035_v2 }
 0x1d9   :  { %879 = vmatprep.subr.bf16.mxu1 %v3038_v61  ;;  %v3416_v61 = vmov 0.0  }
 0x1dc   :  { %880 = vmatpush1.bf16.msra.mxu1 %v3041_v26  ;;  %v3115_v26 = vld [vmem:[#allocation6 + $0x1cc] ss:$16 sps:$4 sm:$0xff]  }
 0x1dd   :  { %881 = vmatprep.subr.bf16.mxu1 %v3044_v27  ;;  %v3065_v27 = vld [vmem:[#allocation6 + $0xc8] ss:$16 sps:$4 sm:$0xff]   ;;  %3410 = vst [vmem:[#allocation54_spill] sm:$0xff] %v3115_v26 }
 0x1de   :  { %3393 = vst [vmem:[#allocation37_spill] sm:$0xff] %v3065_v27 }
 0x1e0   :  { %882 = vmatpush1.bf16.msra.mxu1 %v3047_v0  ;;  %v3068_v0 = vld [vmem:[#allocation6 + $0xec] ss:$16 sps:$4 sm:$0xff]  }
 0x1e1   :  { %883 = vmatprep.subr.bf16.mxu1 %v3050_v62  ;;  %3394 = vst [vmem:[#allocation38_spill] sm:$0xff] %v3068_v0  ;;  %v3071_v62 = vld [vmem:[#allocation6 + $0xe8] ss:$16 sps:$4 sm:$0xff]  }
 0x1e2   :  { %3395 = vst [vmem:[#allocation39_spill] sm:$0xff] %v3071_v62 }
 0x1e4   :  { %884 = vmatpush1.bf16.msra.mxu1 %v3053_v28  ;;  %v3074_v28 = vld [vmem:[#allocation6 + $0x10c] ss:$16 sps:$4 sm:$0xff]  }
 0x1e5   :  { %885 = vmatprep.subr.bf16.mxu1 %v3056_v29  ;;  %3396 = vst [vmem:[#allocation40_spill] sm:$0xff] %v3074_v28  ;;  %v3077_v29 = vld [vmem:[#allocation6 + $0x108] ss:$16 sps:$4 sm:$0xff]  }
 0x1e6   :  { %3397 = vst [vmem:[#allocation41_spill] sm:$0xff] %v3077_v29 }
 0x1e8   :  { %886 = vmatpush1.bf16.msra.mxu1 %v3059_v30  ;;  %v3080_v30 = vld [vmem:[#allocation6 + $0x12c] ss:$16 sps:$4 sm:$0xff]  }
 0x1e9   :  { %887 = vmatprep.subr.bf16.mxu1 %v3062_v37  ;;  %3398 = vst [vmem:[#allocation42_spill] sm:$0xff] %v3080_v30  ;;  %v3083_v37 = vld [vmem:[#allocation6 + $0x128] ss:$16 sps:$4 sm:$0xff]  }
 0x1ea   :  { %3399 = vst [vmem:[#allocation43_spill] sm:$0xff] %v3083_v37 }
 0x1ec   :  { %888 = vmatpush1.bf16.msra.mxu1 %v3065_v27  ;;  %v3086_v27 = vld [vmem:[#allocation6 + $0x14c] ss:$16 sps:$4 sm:$0xff]  }
 0x1ed   :  { %889 = vmatprep.subr.bf16.mxu1 %v3068_v0  ;;  %3400 = vst [vmem:[#allocation44_spill] sm:$0xff] %v3086_v27  ;;  %v3089_v0 = vld [vmem:[#allocation6 + $0x148] ss:$16 sps:$4 sm:$0xff]  }
 0x1ee   :  { %3401 = vst [vmem:[#allocation45_spill] sm:$0xff] %v3089_v0 }
 0x1f0   :  { %890 = vmatpush1.bf16.msra.mxu1 %v3071_v62  ;;  %v3092_v62 = vld [vmem:[#allocation6 + $0x16c] ss:$16 sps:$4 sm:$0xff]  }
 0x1f1   :  { %891 = vmatprep.subr.bf16.mxu1 %v3074_v28  ;;  %3402 = vst [vmem:[#allocation46_spill] sm:$0xff] %v3092_v62  ;;  %v3095_v28 = vld [vmem:[#allocation6 + $0x168] ss:$16 sps:$4 sm:$0xff]  }
 0x1f2   :  { %3403 = vst [vmem:[#allocation47_spill] sm:$0xff] %v3095_v28 }
 0x1f4   :  { %892 = vmatpush1.bf16.msra.mxu1 %v3077_v29  ;;  %v3098_v29 = vld [vmem:[#allocation6 + $0x18c] ss:$16 sps:$4 sm:$0xff]  }
 0x1f5   :  { %893 = vmatprep.subr.bf16.mxu1 %v3080_v30  ;;  %3404 = vst [vmem:[#allocation48_spill] sm:$0xff] %v3098_v29  ;;  %v3101_v30 = vld [vmem:[#allocation6 + $0x188] ss:$16 sps:$4 sm:$0xff]  }
 0x1f6   :  { %3405 = vst [vmem:[#allocation49_spill] sm:$0xff] %v3101_v30 }
 0x1f8   :  { %894 = vmatpush1.bf16.msra.mxu1 %v3083_v37  ;;  %v3104_v37 = vld [vmem:[#allocation6 + $0x1ac] ss:$16 sps:$4 sm:$0xff]  }
 0x1f9   :  { %895 = vmatprep.subr.bf16.mxu1 %v3086_v27  ;;  %3406 = vst [vmem:[#allocation50_spill] sm:$0xff] %v3104_v37  ;;  %v3107_v27 = vld [vmem:[#allocation6 + $0x1a8] ss:$16 sps:$4 sm:$0xff]  }
 0x1fa   :  { %3407 = vst [vmem:[#allocation51_spill] sm:$0xff] %v3107_v27 }
 0x1fc   :  { %896 = vmatpush1.bf16.msra.mxu1 %v3089_v0  ;;  %v3111_v0 = vld [vmem:[#allocation6 + $0x1c4] ss:$16 sps:$4 sm:$0xff]  }
 0x1fd   :  { %897 = vmatprep.subr.bf16.mxu1 %v3092_v62  ;;  %3408 = vst [vmem:[#allocation52_spill] sm:$0xff] %v3111_v0  ;;  %v3113_v62 = vld [vmem:[#allocation6 + $0x1c0] ss:$16 sps:$4 sm:$0xff]   ;;  %862 = vmatprep.subr.bf16.mxu0 %v3111_v0 }
 0x1fe   :  { %3409 = vst [vmem:[#allocation53_spill] sm:$0xff] %v3113_v62  ;;  %863 = vmatpush1.bf16.msra.mxu0 %v3113_v62 }
 0x200   :  { %898 = vmatpush1.bf16.msra.mxu1 %v3095_v28  ;;  %v3118_v28 = vld [vmem:[#allocation6 + $0x1c8] ss:$16 sps:$4 sm:$0xff]  }
 0x201   :  { %899 = vmatprep.subr.bf16.mxu1 %v3098_v29  ;;  %3411 = vst [vmem:[#allocation55_spill] sm:$0xff] %v3118_v28  ;;  %v3130_v29 = vld [vmem:[#allocation6 + $0x1e8] ss:$16 sps:$4 sm:$0xff]  }
 0x202   :  { %3415 = vst [vmem:[#allocation59_spill] sm:$0xff] %v3130_v29 }
 0x204   :  { %900 = vmatpush1.bf16.msra.mxu1 %v3101_v30  ;;  %v3123_v30 = vld [vmem:[#allocation6 + $0x1e4] ss:$16 sps:$4 sm:$0xff]  }
 0x205   :  { %901 = vmatprep.subr.bf16.mxu1 %v3104_v37  ;;  %3412 = vst [vmem:[#allocation56_spill] sm:$0xff] %v3123_v30  ;;  %v3125_v37 = vld [vmem:[#allocation6 + $0x1e0] ss:$16 sps:$4 sm:$0xff]   ;;  %864 = vmatprep.subr.bf16.mxu0 %v3123_v30 }
 0x206   :  { %3413 = vst [vmem:[#allocation57_spill] sm:$0xff] %v3125_v37  ;;  %865 = vmatpush1.bf16.msra.mxu0 %v3125_v37 }
 0x207   :  { %2250 = vmatprep.subr.bf16.mxu0 %v3416_v61 }
 0x208   :  { %902 = vmatpush1.bf16.msra.mxu1 %v3107_v27  ;;  %v3127_v27 = vld [vmem:[#allocation6 + $0x1ec] ss:$16 sps:$4 sm:$0xff]  }
 0x209   :  { %903 = vmatprep.subr.bf16.mxu1 %v3115_v26  ;;  %3414 = vst [vmem:[#allocation58_spill] sm:$0xff] %v3127_v27 }
 0x20c   :  { %904 = vmatpush1.bf16.msra.mxu1 %v3118_v28  ;;  %v3361_v28 = vlaneseq }
 0x20d   :  { %905 = vmatprep.subr.bf16.mxu1 %v3127_v27 }
 0x20e   :  { %v3138_v26 = vshrl.u32 %v3361_v28, 7 }
 0x210   :  { %906 = vmatpush1.bf16.msra.mxu1 %v3130_v29  ;;  %v3370_v2 = vsub.s32 0, %v3138_v26  ;;  %v295_v1 = vsub.s32 1, %v3138_v26 }
 0x211   :  { %982 = vmatprep.subr.bf16.mxu1 %v2855_v6 }
 0x212   :  { %v3147_v27 = vrot.slane %v287_v63, %v3370_v2  ;;  %v3151_v29 = vrot.slane %v287_v63, %v295_v1  ;;  %v3417_v63 = vmov 0  }
 0x2a6   :  { %v413_v6 = vpop.f32.mrb[0].mxu1 }
 0x2a7   :  { %v414_v28 = vadd.f32 %v413_v6, %v3147_v27  ;;  %v415_v25 = vpop.f32.mrb[1].mxu1  ;;  %v3453_v6 = vld [vmem:[#allocation47_spill] sm:$0xff] }
 0x2a8   :  { %v416_v37 = vadd.f32 %v415_v25, %v3151_v29  ;;  %v417_v30 = vpop.f32.mrb[2].mxu1  ;;  %v3447_v25 = vld [vmem:[#allocation41_spill] sm:$0xff] }
 0x2a9   :  { %vm420_vm3 = vcmp.ge.f32.partialorder %v414_v28, 0.0  ;;  %v422_v62 = vmul.f32 0.01, %v414_v28  ;;  %v418_v0 = vpop.f32.mrb[3].mxu1  ;;  %v3451_v30 = vld [vmem:[#allocation45_spill] sm:$0xff] }
 0x2aa   :  { %vm421_vm4 = vcmp.ge.f32.partialorder %v416_v37, 0.0  ;;  %v423_v60 = vmul.f32 0.01, %v416_v37  ;;  %v3448_v0 = vld [vmem:[#allocation42_spill] sm:$0xff] }
 0x2ab   :  { %v424_v59 = vsel %vm420_vm3, %v414_v28, %v422_v62  ;;  %v3449_v62 = vld [vmem:[#allocation43_spill] sm:$0xff]  ;;  %v3450_v28 = vld [vmem:[#allocation44_spill] sm:$0xff] }
 0x2ac   :  { %v425_v58 = vsel %vm421_vm4, %v416_v37, %v423_v60  ;;  %v490_v57 = vpack.c.bf16 %v424_v59, %v424_v59  ;;  %v3444_v59 = vld [vmem:[#allocation38_spill] sm:$0xff]  ;;  %v3445_v60 = vld [vmem:[#allocation39_spill] sm:$0xff] }
 0x2ad   :  { %v491_v2 = vpack.c.bf16 %v425_v58, %v425_v58  ;;  %v3443_v58 = vld [vmem:[#allocation37_spill] sm:$0xff]  ;;  %v3452_v37 = vld [vmem:[#allocation46_spill] sm:$0xff] }
 0x2af   :  { %866 = vmatprep.mubr.bf16.mxu0 %v491_v2  ;;  %907 = vmatprep.mubr.bf16.mxu1 %v491_v2  ;;  %v3446_v2 = vld [vmem:[#allocation40_spill] sm:$0xff] }
 0x2b0   :  { %867 = vmatmul.mubr.bf16.vlgmr.msra.gmra.mrb[4].mxu0 %v490_v57  ;;  %908 = vmatmul.mubr.bf16.vlgmr.msra.gmra.mrb[4].mxu1 %v490_v57  ;;  %v3442_v57 = vld [vmem:[#allocation36_spill] sm:$0xff] }
 0x2b1   :  { %2251 = vmatpush3.bf16.msra.mxu0 %v2843_v3  ;;  %2266 = vmatprep.mubr.msk.bf16.mxu0 %vm2666_vm0, %v3416_v61  ;;  %v930_v3 = vpop.permute.xlu0 %929 }
 0x2b2   :  { %2252 = vmatprep.subr.bf16.mxu0 %v3416_v61  ;;  %983 = vmatpush1.bf16.msra.mxu1 %v2857_v7 }
 0x2b3   :  { %984 = vmatprep.subr.bf16.mxu1 %v2862_v9  ;;  %1014 = vmatprep.mubr.bf16.mxu1 %v3417_v63  ;;  %v3454_v63 = vld [vmem:[#allocation48_spill] sm:$0xff] }
 0x2b5   :  { %2253 = vmatpush3.bf16.msra.mxu0 %v2846_v4  ;;  %v932_v4 = vmul.f32 %v2915_v23, %v930_v3  ;;  %v3455_v3 = vld [vmem:[#allocation49_spill] sm:$0xff] }
 0x2b6   :  { %2254 = vmatprep.subr.bf16.mxu0 %v3416_v61  ;;  %985 = vmatpush1.bf16.msra.mxu1 %v2867_v10  ;;  %v3418_v10 = vld [vmem:[#allocation16_spill] sm:$0xff] }
 0x2b7   :  { %986 = vmatprep.subr.bf16.mxu1 %v2870_v11  ;;  %v3419_v11 = vld [vmem:[#allocation17_spill] sm:$0xff] }
 0x2b9   :  { %2255 = vmatpush3.bf16.msra.mxu0 %v2852_v5  ;;  %v933_v5 = vadd.f32 %v2920_v24, %v932_v4  ;;  %v3456_v4 = vld [vmem:[#allocation50_spill] sm:$0xff] }
 0x2ba   :  { %2256 = vmatprep.subr.bf16.mxu0 %v3416_v61  ;;  %987 = vmatpush1.bf16.msra.mxu1 %v2876_v13  ;;  %v3421_v13 = vld [vmem:[#allocation19_spill] sm:$0xff] }
 0x2bb   :  { %988 = vmatprep.subr.bf16.mxu1 %v2881_v15  ;;  %v935_v7 = vmul.f32 0.01, %v933_v5  ;;  %vm934_vm5 = vcmp.ge.f32.partialorder %v933_v5, 0.0  ;;  %v3423_v15 = vld [vmem:[#allocation21_spill] sm:$0xff] }
 0x2bd   :  { %2257 = vmatpush3.bf16.msra.mxu0 %v2860_v8  ;;  %v936_v8 = vsel %vm934_vm5, %v933_v5, %v935_v7  ;;  %v3457_v5 = vld [vmem:[#allocation51_spill] sm:$0xff]  ;;  %v3458_v7 = vld [vmem:[#allocation54_spill] sm:$0xff] }
 0x2be   :  { %2258 = vmatprep.subr.bf16.mxu0 %v3416_v61  ;;  %989 = vmatpush1.bf16.msra.mxu1 %v2885_v16  ;;  %v937_v9 = vpack.c.bf16 %v936_v8, %v936_v8  ;;  %v3424_v16 = vld [vmem:[#allocation22_spill] sm:$0xff]  ;;  %v3459_v8 = vld [vmem:[#allocation55_spill] sm:$0xff] }
 0x2bf   :  { %990 = vmatprep.subr.bf16.mxu1 %v2888_v17  ;;  %v3425_v17 = vld [vmem:[#allocation23_spill] sm:$0xff] }
 0x2c1   :  { %2259 = vmatpush3.bf16.msra.mxu0 %v2873_v12  ;;  %v3420_v12 = vld [vmem:[#allocation18_spill] sm:$0xff] }
 0x2c2   :  { %2260 = vmatprep.subr.bf16.mxu0 %v3416_v61  ;;  %991 = vmatpush1.bf16.msra.mxu1 %v2895_v19  ;;  %v3427_v19 = vld [vmem:[#allocation53_spill] sm:$0xff] }
 0x2c3   :  { %992 = vmatprep.subr.bf16.mxu1 %v2898_v20  ;;  %v3428_v20 = vld [vmem:[#allocation56_spill] sm:$0xff] }
 0x2c5   :  { %2261 = vmatpush3.bf16.msra.mxu0 %v2878_v14  ;;  %v3422_v14 = vld [vmem:[#allocation20_spill] sm:$0xff] }
 0x2c6   :  { %2262 = vmatprep.subr.bf16.mxu0 %v3416_v61  ;;  %993 = vmatpush1.bf16.msra.mxu1 %v2905_v22 }
 0x2c7   :  { %994 = vmatprep.subr.bf16.mxu1 %v2924_v31 }
 0x2c9   :  { %2263 = vmatpush3.bf16.msra.mxu0 %v2890_v18  ;;  %v3426_v18 = vld [vmem:[#allocation52_spill] sm:$0xff] }
 0x2ca   :  { %2264 = vmatprep.subr.bf16.mxu0 %v3416_v61  ;;  %995 = vmatpush1.bf16.msra.mxu1 %v2926_v32 }
 0x2cb   :  { %996 = vmatprep.subr.bf16.mxu1 %v2930_v33 }
 0x2cd   :  { %2265 = vmatpush3.bf16.msra.mxu0 %v2900_v21  ;;  %v3429_v21 = vld [vmem:[#allocation57_spill] sm:$0xff] }
 0x2ce   :  { %997 = vmatpush1.bf16.msra.mxu1 %v2932_v34  ;;  %1031 = vmatprep.subr.bf16.mxu0 %v2938_v36 }
 0x2cf   :  { %1072 = vmatprep.subr.bf16.mxu1 %v2940_v38  ;;  %v3430_v38 = vld [vmem:[#allocation24_spill] sm:$0xff] }
 0x2d0   :  { %2267 = vmatmul.mubr.bf16.vlgmr.msra.gmra.mrb[8].mxu0 %v937_v9  ;;  %v3460_v9 = vld [vmem:[#allocation58_spill] sm:$0xff] }
 0x2d1   :  { %1032 = vmatpush1.bf16.msra.mxu0 %v2936_v35 }
 0x2d2   :  { %1033 = vmatprep.subr.bf16.mxu0 %v2944_v39 }
 0x2d5   :  { %1034 = vmatpush1.bf16.msra.mxu0 %v2948_v40 }
 0x2d6   :  { %1035 = vmatprep.subr.bf16.mxu0 %v2951_v41 }
 0x2d9   :  { %1036 = vmatpush1.bf16.msra.mxu0 %v2954_v42 }
 0x2da   :  { %1037 = vmatprep.subr.bf16.mxu0 %v2957_v43 }
 0x2dd   :  { %1038 = vmatpush1.bf16.msra.mxu0 %v2960_v44 }
 0x2de   :  { %1039 = vmatprep.subr.bf16.mxu0 %v2963_v45 }
 0x2e1   :  { %1040 = vmatpush1.bf16.msra.mxu0 %v2966_v46  ;;  %v3431_v46 = vld [vmem:[#allocation25_spill] sm:$0xff] }
 0x2e2   :  { %1041 = vmatprep.subr.bf16.mxu0 %v2969_v47  ;;  %v3432_v47 = vld [vmem:[#allocation26_spill] sm:$0xff] }
 0x2e5   :  { %1042 = vmatpush1.bf16.msra.mxu0 %v2972_v48  ;;  %v3433_v48 = vld [vmem:[#allocation27_spill] sm:$0xff] }
 0x2e6   :  { %1043 = vmatprep.subr.bf16.mxu0 %v2975_v49  ;;  %v3434_v49 = vld [vmem:[#allocation28_spill] sm:$0xff] }
 0x2e9   :  { %1044 = vmatpush1.bf16.msra.mxu0 %v2978_v50  ;;  %v3435_v50 = vld [vmem:[#allocation29_spill] sm:$0xff] }
 0x2ea   :  { %1045 = vmatprep.subr.bf16.mxu0 %v2981_v51  ;;  %v3436_v51 = vld [vmem:[#allocation30_spill] sm:$0xff] }
 0x2ed   :  { %1046 = vmatpush1.bf16.msra.mxu0 %v2984_v52  ;;  %v3437_v52 = vld [vmem:[#allocation31_spill] sm:$0xff] }
 0x2ee   :  { %1047 = vmatprep.subr.bf16.mxu0 %v2987_v53  ;;  %v3438_v53 = vld [vmem:[#allocation32_spill] sm:$0xff] }
 0x2f1   :  { %1048 = vmatpush1.bf16.msra.mxu0 %v2990_v54  ;;  %v3439_v54 = vld [vmem:[#allocation33_spill] sm:$0xff] }
 0x2f2   :  { %1049 = vmatprep.subr.bf16.mxu0 %v2993_v55  ;;  %v3440_v55 = vld [vmem:[#allocation34_spill] sm:$0xff] }
 0x2f5   :  { %1050 = vmatpush1.bf16.msra.mxu0 %v2996_v56  ;;  %v3441_v56 = vld [vmem:[#allocation35_spill] sm:$0xff] }
 0x2f6   :  { %1051 = vmatprep.subr.bf16.mxu0 %v3418_v10  ;;  %v3461_v10 = vld [vmem:[#allocation59_spill] sm:$0xff] }
 0x2f9   :  { %1052 = vmatpush1.bf16.msra.mxu0 %v3419_v11  ;;  %v2436_v11 = vld [vmem:[#allocation9 + $0x40] sm:$0xff]  }
 0x2fa   :  { %1053 = vmatprep.subr.bf16.mxu0 %v3420_v12  ;;  %v2437_v12 = vld [vmem:[#allocation9 + $0xc0] sm:$0xff]  }
 0x2fd   :  { %1054 = vmatpush1.bf16.msra.mxu0 %v3421_v13 }
 0x2fe   :  { %1055 = vmatprep.subr.bf16.mxu0 %v3422_v14 }
 0x301   :  { %1056 = vmatpush1.bf16.msra.mxu0 %v3423_v15 }
 0x302   :  { %1057 = vmatprep.subr.bf16.mxu0 %v3424_v16 }
 0x305   :  { %1058 = vmatpush1.bf16.msra.mxu0 %v3425_v17 }
 0x306   :  { %1059 = vmatprep.subr.bf16.mxu0 %v3426_v18 }
 0x309   :  { %1060 = vmatpush1.bf16.msra.mxu0 %v3427_v19 }
 0x30a   :  { %1061 = vmatprep.subr.bf16.mxu0 %v3428_v20 }
 0x30d   :  { %1062 = vmatpush1.bf16.msra.mxu0 %v3429_v21 }
 0x30e   :  { %2133 = vmatprep.subr.bf16.mxu0 %v2436_v11 }
 0x383   :  { %v3223_v22 = vpop.f32.mrb[4].mxu0  ;;  %v3225_v23 = vpop.f32.mrb[4].mxu1 }
 0x384   :  { %v3227_v24 = vpop.f32.mrb[5].mxu0  ;;  %v3229_v31 = vpop.f32.mrb[5].mxu1 }
 0x385   :  { %v872_v32 = vpop.f32.mrb[6].mxu0  ;;  %v913_v33 = vpop.f32.mrb[6].mxu1 }
 0x386   :  { %v873_v34 = vpop.f32.mrb[7].mxu0  ;;  %v914_v35 = vpop.f32.mrb[7].mxu1 }
 0x387   :  { %v2438_v34 = vld [vmem:[#allocation9] sm:$0xff]  }
 0x388   :  { %v2439_v35 = vld [vmem:[#allocation9 + $0x80] sm:$0xff]  }
 0x3a3   :  { %v972_v36 = vpop.f32.mrb[8].mxu0 }
 0x3a4   :  { %v973_v39 = vadd.f32 %v3430_v38, %v972_v36  ;;  %v2268_v40 = vpop.f32.mrb[9].mxu0  ;;  %v2440_v38 = vld [vmem:[#allocation9 + $0x48] sm:$0xff]  }
 0x3a5   :  { %v975_v41 = vpop.f32.mrb[10].mxu0  ;;  %v2444_v40 = vld [vmem:[#allocation9 + $0x50] sm:$0xff]  }
 0x3a6   :  { %vm978_vm6 = vcmp.ge.f32.partialorder %v973_v39, 0.0  ;;  %v979_v42 = vmul.f32 0.01, %v973_v39  ;;  %v2269_v43 = vpop.f32.mrb[11].mxu0  ;;  %v2445_v41 = vld [vmem:[#allocation9 + $0xd0] sm:$0xff]  }
 0x3a7   :  { %v2447_v43 = vld [vmem:[#allocation9 + $0x90] sm:$0xff]  }
 0x3a8   :  { %v980_v44 = vsel %vm978_vm6, %v973_v39, %v979_v42  ;;  %v2441_v39 = vld [vmem:[#allocation9 + $0xc8] sm:$0xff]   ;;  %v2446_v42 = vld [vmem:[#allocation9 + $0x10] sm:$0xff]  }
 0x3a9   :  { %v981_v45 = vpack.c.bf16 %v980_v44, %v980_v44  ;;  %v2448_v44 = vld [vmem:[#allocation9 + $0x58] sm:$0xff]  }
 0x3ab   :  { %1015 = vmatmul.mubr.bf16.vlgmr.msra.gmra.mrb[8].mxu1 %v981_v45  ;;  %v2449_v45 = vld [vmem:[#allocation9 + $0xd8] sm:$0xff]  }
 0x3ac   :  { %1073 = vmatpush1.bf16.msra.mxu1 %v3431_v46  ;;  %v2450_v46 = vld [vmem:[#allocation9 + $0x18] sm:$0xff]  }
 0x3ad   :  { %1074 = vmatprep.subr.bf16.mxu1 %v3432_v47  ;;  %v2451_v47 = vld [vmem:[#allocation9 + $0x98] sm:$0xff]  }
 0x3b0   :  { %1075 = vmatpush1.bf16.msra.mxu1 %v3433_v48  ;;  %v2452_v48 = vld [vmem:[#allocation9 + $0x60] sm:$0xff]  }
 0x3b1   :  { %1076 = vmatprep.subr.bf16.mxu1 %v3434_v49  ;;  %v2453_v49 = vld [vmem:[#allocation9 + $0xe0] sm:$0xff]  }
 0x3b4   :  { %1077 = vmatpush1.bf16.msra.mxu1 %v3435_v50  ;;  %v2454_v50 = vld [vmem:[#allocation9 + $0x20] sm:$0xff]  }
 0x3b5   :  { %1078 = vmatprep.subr.bf16.mxu1 %v3436_v51  ;;  %v2455_v51 = vld [vmem:[#allocation9 + $0xa0] sm:$0xff]  }
 0x3b8   :  { %1079 = vmatpush1.bf16.msra.mxu1 %v3437_v52  ;;  %v2456_v52 = vld [vmem:[#allocation9 + $0x68] sm:$0xff]  }
 0x3b9   :  { %1080 = vmatprep.subr.bf16.mxu1 %v3438_v53  ;;  %v2457_v53 = vld [vmem:[#allocation9 + $0xe8] sm:$0xff]  }
 0x3bc   :  { %1081 = vmatpush1.bf16.msra.mxu1 %v3439_v54  ;;  %v2458_v54 = vld [vmem:[#allocation9 + $0x28] sm:$0xff]  }
 0x3bd   :  { %1082 = vmatprep.subr.bf16.mxu1 %v3440_v55  ;;  %v2459_v55 = vld [vmem:[#allocation9 + $0xa8] sm:$0xff]  }
 0x3c0   :  { %1083 = vmatpush1.bf16.msra.mxu1 %v3441_v56  ;;  %v2460_v56 = vld [vmem:[#allocation9 + $0x70] sm:$0xff]  }
 0x3c1   :  { %1084 = vmatprep.subr.bf16.mxu1 %v3442_v57  ;;  %v2461_v57 = vld [vmem:[#allocation9 + $0xf0] sm:$0xff]  }
 0x3c4   :  { %1085 = vmatpush1.bf16.msra.mxu1 %v3443_v58  ;;  %v2462_v58 = vld [vmem:[#allocation9 + $0x30] sm:$0xff]  }
 0x3c5   :  { %1086 = vmatprep.subr.bf16.mxu1 %v3444_v59  ;;  %v2463_v59 = vld [vmem:[#allocation9 + $0xb0] sm:$0xff]  }
 0x3c8   :  { %1087 = vmatpush1.bf16.msra.mxu1 %v3445_v60  ;;  %v2464_v60 = vld [vmem:[#allocation9 + $0x78] sm:$0xff]  }
 0x3c9   :  { %1088 = vmatprep.subr.bf16.mxu1 %v3446_v2  ;;  %v2465_v2 = vld [vmem:[#allocation9 + $0xf8] sm:$0xff]  }
 0x3cc   :  { %1089 = vmatpush1.bf16.msra.mxu1 %v3447_v25  ;;  %v2466_v25 = vld [vmem:[#allocation9 + $0x38] sm:$0xff]  }
 0x3cd   :  { %1090 = vmatprep.subr.bf16.mxu1 %v3448_v0  ;;  %v2467_v0 = vld [vmem:[#allocation9 + $0xb8] sm:$0xff]  }
 0x3d0   :  { %1091 = vmatpush1.bf16.msra.mxu1 %v3449_v62  ;;  %v2468_v62 = vld [vmem:[#allocation7 + $0x40] sm:$0xff]  }
 0x3d1   :  { %1092 = vmatprep.subr.bf16.mxu1 %v3450_v28  ;;  %v2469_v28 = vld [vmem:[#allocation7 + $0xc0] sm:$0xff]  }
 0x3d4   :  { %1093 = vmatpush1.bf16.msra.mxu1 %v3451_v30  ;;  %v492_v30 = vld [vmem:[%s3316_s8] sm:$0xf] }
 0x3d5   :  { %1094 = vmatprep.subr.bf16.mxu1 %v3452_v37  ;;  %v508_v37 = vsub.s32 3, %v3138_v26 }
 0x3d8   :  { %1095 = vmatpush1.bf16.msra.mxu1 %v3453_v6  ;;  %v501_v6 = vrot.slane %v492_v30, %v295_v1 }
 0x3d9   :  { %1096 = vmatprep.subr.bf16.mxu1 %v3454_v63  ;;  %v509_v63 = vrot.slane %v492_v30, %v508_v37  ;;  %v2492_v37 = vld [vmem:[#allocation7 + $0x70] sm:$0xff]  }
 0x3dc   :  { %1097 = vmatpush1.bf16.msra.mxu1 %v3455_v3  ;;  %v504_v3 = vsub.s32 2, %v3138_v26 }
 0x3dd   :  { %1098 = vmatprep.subr.bf16.mxu1 %v3456_v4  ;;  %v871_v4 = vadd.f32 %v3227_v24, %v501_v6 }
 0x3df   :  { %vm917_vm9 = vcmp.ge.f32.partialorder %v871_v4, 0.0 }
 0x3e0   :  { %1099 = vmatpush1.bf16.msra.mxu1 %v3457_v5  ;;  %v912_v5 = vadd.f32 %v3229_v31, %v509_v63 }
 0x3e1   :  { %1100 = vmatprep.subr.bf16.mxu1 %v3458_v7  ;;  %v3462_v7 = vsub.s32 0, %v3138_v26 }
 0x3e2   :  { %vm919_vm10 = vcmp.ge.f32.partialorder %v912_v5, 0.0  ;;  %v923_v24 = vmul.f32 0.01, %v912_v5 }
 0x3e4   :  { %1101 = vmatpush1.bf16.msra.mxu1 %v3459_v8  ;;  %v3276_v8 = vrot.slane %v492_v30, %v3462_v7  ;;  %v2496_v7 = vld [vmem:[#allocation7 + $0x78] sm:$0xff]  }
 0x3e5   :  { %1102 = vmatprep.subr.bf16.mxu1 %v3460_v9  ;;  %v3278_v9 = vrot.slane %v492_v30, %v504_v3  ;;  %v2491_v30 = vld [vmem:[#allocation7 + $0xa8] sm:$0xff]  }
 0x3e7   :  { %v910_v3 = vadd.f32 %v3225_v23, %v3278_v9 }
 0x3e8   :  { %1103 = vmatpush1.bf16.msra.mxu1 %v3461_v10 }
 0x3e9   :  { %2155 = vmatprep.subr.bf16.mxu1 %v2437_v12  ;;  %v921_v12 = vmul.f32 0.01, %v871_v4  ;;  %vm918_vm1 = vcmp.ge.f32.partialorder %v910_v3, 0.0 }
 0x47e   :  { %v1016_v13 = vpop.f32.mrb[8].mxu1 }
 0x47f   :  { %v1017_v14 = vadd.f32 %v1016_v13, %v3147_v27  ;;  %v1018_v15 = vpop.f32.mrb[9].mxu1  ;;  %v2442_v27 = vld [vmem:[#allocation9 + $0x8] sm:$0xff]  }
 0x480   :  { %v1019_v16 = vadd.f32 %v1018_v15, %v3151_v29  ;;  %v1020_v17 = vpop.f32.mrb[10].mxu1  ;;  %v2443_v29 = vld [vmem:[#allocation9 + $0x88] sm:$0xff]  }
 0x481   :  { %vm1023_vm7 = vcmp.ge.f32.partialorder %v1017_v14, 0.0  ;;  %v1025_v18 = vmul.f32 0.01, %v1017_v14  ;;  %v1021_v19 = vpop.f32.mrb[11].mxu1 }
 0x482   :  { %vm1024_vm8 = vcmp.ge.f32.partialorder %v1019_v16, 0.0  ;;  %v1026_v20 = vmul.f32 0.01, %v1019_v16 }
 0x483   :  { %v1027_v21 = vsel %vm1023_vm7, %v1017_v14, %v1025_v18 }
 0x484   :  { %v1028_v32 = vsel %vm1024_vm8, %v1019_v16, %v1026_v20  ;;  %v1029_v36 = vpack.c.bf16 %v1027_v21, %v1027_v21 }
 0x485   :  { %v1030_v33 = vpack.c.bf16 %v1028_v32, %v1028_v32 }
 0x487   :  { %1063 = vmatprep.mubr.bf16.mxu0 %v1030_v33  ;;  %1104 = vmatprep.mubr.bf16.mxu1 %v1030_v33 }
 0x488   :  { %1064 = vmatmul.mubr.bf16.vlgmr.msra.gmra.mrb[12].mxu0 %v1029_v36  ;;  %1105 = vmatmul.mubr.bf16.vlgmr.msra.gmra.mrb[12].mxu1 %v1029_v36 }
 0x489   :  { %2134 = vmatpush3.bf16.msra.mxu0 %v2438_v34  ;;  %2156 = vmatpush3.bf16.msra.mxu1 %v2439_v35 }
 0x48a   :  { %2135 = vmatprep.subr.bf16.mxu0 %v2440_v38  ;;  %2157 = vmatprep.subr.bf16.mxu1 %v2441_v39 }
 0x48d   :  { %2136 = vmatpush3.bf16.msra.mxu0 %v2442_v27  ;;  %2158 = vmatpush3.bf16.msra.mxu1 %v2443_v29  ;;  %v2470_v29 = vld [vmem:[#allocation7] sm:$0xff]  }
 0x48e   :  { %2137 = vmatprep.subr.bf16.mxu0 %v2444_v40  ;;  %2159 = vmatprep.subr.bf16.mxu1 %v2445_v41  ;;  %v2471_v40 = vld [vmem:[#allocation7 + $0x80] sm:$0xff]   ;;  %v925_v41 = vsel %vm917_vm9, %v871_v4, %v921_v12  ;;  %v2494_v4 = vld [vmem:[#allocation7 + $0x30] sm:$0xff]   ;;  %v922_v12 = vmul.f32 0.01, %v910_v3 }
 0x490   :  { %v926_v23 = vsel %vm918_vm1, %v910_v3, %v922_v12 }
 0x491   :  { %2138 = vmatpush3.bf16.msra.mxu0 %v2446_v42  ;;  %2160 = vmatpush3.bf16.msra.mxu1 %v2447_v43  ;;  %v927_v42 = vsel %vm919_vm10, %v912_v5, %v923_v24  ;;  %v2495_v5 = vld [vmem:[#allocation7 + $0xb0] sm:$0xff]  }
 0x492   :  { %2139 = vmatprep.subr.bf16.mxu0 %v2448_v44  ;;  %2161 = vmatprep.subr.bf16.mxu1 %v2449_v45  ;;  %v2472_v45 = vld [vmem:[#allocation7 + $0x48] sm:$0xff]   ;;  %v2502_v24 = vld [vmem:[#allocation10 + $0x10] sm:$0xff]  }
 0x495   :  { %2140 = vmatpush3.bf16.msra.mxu0 %v2450_v46  ;;  %2162 = vmatpush3.bf16.msra.mxu1 %v2451_v47  ;;  %v2473_v46 = vld [vmem:[#allocation7 + $0xc8] sm:$0xff]   ;;  %v1190_v47 = vpack.c.bf16 %v925_v41, %v925_v41 }
 0x496   :  { %2141 = vmatprep.subr.bf16.mxu0 %v2452_v48  ;;  %2163 = vmatprep.subr.bf16.mxu1 %v2453_v49  ;;  %v1192_v48 = vpack.c.bf16 %v927_v42, %v927_v42  ;;  %v2474_v49 = vld [vmem:[#allocation7 + $0x8] sm:$0xff]  }
 0x499   :  { %2142 = vmatpush3.bf16.msra.mxu0 %v2454_v50  ;;  %2164 = vmatpush3.bf16.msra.mxu1 %v2455_v51  ;;  %v2475_v50 = vld [vmem:[#allocation7 + $0x88] sm:$0xff]   ;;  %v2476_v51 = vld [vmem:[#allocation7 + $0x50] sm:$0xff]  }
 0x49a   :  { %2143 = vmatprep.subr.bf16.mxu0 %v2456_v52  ;;  %2165 = vmatprep.subr.bf16.mxu1 %v2457_v53  ;;  %v2477_v52 = vld [vmem:[#allocation7 + $0xd0] sm:$0xff]  }
 0x49b   :  { %v2478_v53 = vld [vmem:[#allocation7 + $0x10] sm:$0xff]  }
 0x49d   :  { %2144 = vmatpush3.bf16.msra.mxu0 %v2458_v54  ;;  %2166 = vmatpush3.bf16.msra.mxu1 %v2459_v55  ;;  %v2479_v54 = vld [vmem:[#allocation7 + $0x90] sm:$0xff]   ;;  %v2480_v55 = vld [vmem:[#allocation7 + $0x58] sm:$0xff]  }
 0x49e   :  { %2145 = vmatprep.subr.bf16.mxu0 %v2460_v56  ;;  %2167 = vmatprep.subr.bf16.mxu1 %v2461_v57  ;;  %v2481_v56 = vld [vmem:[#allocation7 + $0xd8] sm:$0xff]  }
 0x49f   :  { %v2482_v57 = vld [vmem:[#allocation7 + $0x18] sm:$0xff]  }
 0x4a1   :  { %2146 = vmatpush3.bf16.msra.mxu0 %v2462_v58  ;;  %2168 = vmatpush3.bf16.msra.mxu1 %v2463_v59  ;;  %v2483_v58 = vld [vmem:[#allocation7 + $0x98] sm:$0xff]   ;;  %v2484_v59 = vld [vmem:[#allocation7 + $0x60] sm:$0xff]  }
 0x4a2   :  { %2147 = vmatprep.subr.bf16.mxu0 %v2464_v60  ;;  %2169 = vmatprep.subr.bf16.mxu1 %v2465_v2  ;;  %v2485_v60 = vld [vmem:[#allocation7 + $0xe0] sm:$0xff]  }
 0x4a3   :  { %v2486_v2 = vld [vmem:[#allocation7 + $0x20] sm:$0xff]  }
 0x4a5   :  { %2148 = vmatpush3.bf16.msra.mxu0 %v2466_v25  ;;  %2170 = vmatpush3.bf16.msra.mxu1 %v2467_v0  ;;  %v2487_v25 = vld [vmem:[#allocation7 + $0xa0] sm:$0xff]   ;;  %v2488_v0 = vld [vmem:[#allocation7 + $0x68] sm:$0xff]  }
 0x4a6   :  { %2177 = vmatprep.subr.bf16.mxu0 %v2468_v62  ;;  %2199 = vmatprep.subr.bf16.mxu1 %v2469_v28  ;;  %v2489_v62 = vld [vmem:[#allocation7 + $0xe8] sm:$0xff]  }
 0x4a7   :  { %v2490_v28 = vld [vmem:[#allocation7 + $0x28] sm:$0xff]  }
 0x55b   :  { %v1065_v10 = vpop.f32.mrb[12].mxu0  ;;  %v1106_v11 = vpop.f32.mrb[12].mxu1 }
 0x55c   :  { %v1066_v13 = vadd.f32 %v1065_v10, %v3276_v8  ;;  %v1107_v1 = vadd.f32 %v1106_v11, %v3278_v9  ;;  %v1067_v14 = vpop.f32.mrb[13].mxu0  ;;  %v1108_v15 = vpop.f32.mrb[13].mxu1  ;;  %v2497_v10 = vld [vmem:[#allocation7 + $0xf8] sm:$0xff]   ;;  %v1191_v9 = vpack.c.bf16 %v926_v23, %v926_v23 }
 0x55d   :  { %v1068_v16 = vadd.f32 %v1067_v14, %v501_v6  ;;  %v1109_v31 = vadd.f32 %v1108_v15, %v509_v63  ;;  %v1069_v17 = vpop.f32.mrb[14].mxu0  ;;  %v1110_v26 = vpop.f32.mrb[14].mxu1  ;;  %v2493_v6 = vld [vmem:[#allocation7 + $0xf0] sm:$0xff]   ;;  %v869_v63 = vadd.f32 %v3223_v22, %v3276_v8  ;;  %v2500_v14 = vld [vmem:[#allocation10] sm:$0xff]   ;;  %v2501_v15 = vld [vmem:[#allocation10 + $0x8] sm:$0xff]  }
 0x55e   :  { %vm1113_vm11 = vcmp.ge.f32.partialorder %v1066_v13, 0.0  ;;  %v1117_v18 = vmul.f32 0.01, %v1066_v13  ;;  %vm1115_vm12 = vcmp.ge.f32.partialorder %v1107_v1, 0.0  ;;  %v1119_v19 = vmul.f32 0.01, %v1107_v1 }
 0x55f   :  { %vm1114_vm13 = vcmp.ge.f32.partialorder %v1068_v16, 0.0  ;;  %v1118_v20 = vmul.f32 0.01, %v1068_v16  ;;  %vm1116_vm14 = vcmp.ge.f32.partialorder %v1109_v31, 0.0  ;;  %v1120_v21 = vmul.f32 0.01, %v1109_v31 }
 0x560   :  { %v1121_v32 = vsel %vm1113_vm11, %v1066_v13, %v1117_v18  ;;  %v1123_v33 = vsel %vm1115_vm12, %v1107_v1, %v1119_v19  ;;  %v1070_v34 = vpop.f32.mrb[15].mxu0  ;;  %v1111_v35 = vpop.f32.mrb[15].mxu1  ;;  %v920_v11 = vmul.f32 0.01, %v869_v63  ;;  %vm916_vm15 = vcmp.ge.f32.partialorder %v869_v63, 0.0  ;;  %v2498_v13 = vld [vmem:[#allocation7 + $0x38] sm:$0xff]  }
 0x561   :  { %v1122_v36 = vsel %vm1114_vm13, %v1068_v16, %v1118_v20  ;;  %v1124_v38 = vsel %vm1116_vm14, %v1109_v31, %v1120_v21  ;;  %v1257_v43 = vpack.c.bf16 %v1121_v32, %v1121_v32  ;;  %v1259_v44 = vpack.c.bf16 %v1123_v33, %v1123_v33  ;;  %v2499_v1 = vld [vmem:[#allocation7 + $0xb8] sm:$0xff]   ;;  %v2504_v31 = vld [vmem:[#allocation10 + $0x20] sm:$0xff]   ;;  %v2505_v17 = vld [vmem:[#allocation10 + $0x28] sm:$0xff]  }
 0x562   :  { %v1258_v39 = vpack.c.bf16 %v1122_v36, %v1122_v36  ;;  %v1260_v27 = vpack.c.bf16 %v1124_v38, %v1124_v38  ;;  %v924_v22 = vsel %vm916_vm15, %v869_v63, %v920_v11  ;;  %v2503_v16 = vld [vmem:[#allocation10 + $0x18] sm:$0xff]   ;;  %v2506_v26 = vld [vmem:[#allocation10 + $0x30] sm:$0xff]  }
 0x563   :  { %v1189_v8 = vpack.c.bf16 %v924_v22, %v924_v22  ;;  %v2507_v18 = vld [vmem:[#allocation10 + $0x38] sm:$0xff]  }
 0x564   :  { %1485 = vmatprep.mubr.bf16.mxu0 %v1258_v39  ;;  %1525 = vmatprep.mubr.bf16.mxu1 %v1260_v27 }
 0x565   :  { %1486 = vmatmul.mubr.bf16.vlgmr.msra.gmra.mrb[16].mxu0 %v1257_v43  ;;  %1526 = vmatmul.mubr.bf16.vlgmr.msra.gmra.mrb[16].mxu1 %v1259_v44 }
 0x566   :  { %2178 = vmatpush3.bf16.msra.mxu0 %v2470_v29  ;;  %2200 = vmatpush3.bf16.msra.mxu1 %v2471_v40 }
 0x567   :  { %1757 = vmatprep.mubr.bf16.mxu0 %v1190_v47  ;;  %1797 = vmatprep.mubr.bf16.mxu1 %v1192_v48 }
 0x568   :  { %2179 = vmatprep.subr.bf16.mxu0 %v2472_v45  ;;  %2201 = vmatprep.subr.bf16.mxu1 %v2473_v46 }
 0x56a   :  { %2180 = vmatpush3.bf16.msra.mxu0 %v2474_v49  ;;  %2202 = vmatpush3.bf16.msra.mxu1 %v2475_v50  ;;  %v2105_v49 = vld [vmem:[%s3319_s11] ss:$0 sm:$0xff] }
 0x56b   :  { %2181 = vmatprep.subr.bf16.mxu0 %v2476_v51  ;;  %2203 = vmatprep.subr.bf16.mxu1 %v2477_v52 }
 0x56e   :  { %2182 = vmatpush3.bf16.msra.mxu0 %v2478_v53  ;;  %2204 = vmatpush3.bf16.msra.mxu1 %v2479_v54 }
 0x56f   :  { %2183 = vmatprep.subr.bf16.mxu0 %v2480_v55  ;;  %2205 = vmatprep.subr.bf16.mxu1 %v2481_v56  ;;  %v3463_v55 = vlaneseq }
 0x571   :  { %v1929_v56 = vand.u32 127, %v3463_v55 }
 0x572   :  { %2184 = vmatpush3.bf16.msra.mxu0 %v2482_v57  ;;  %2206 = vmatpush3.bf16.msra.mxu1 %v2483_v58  ;;  %v2106_v57 = vld [vmem:[%s3321_s13] ss:$0 sm:$0xff] }
 0x573   :  { %2185 = vmatprep.subr.bf16.mxu0 %v2484_v59  ;;  %2207 = vmatprep.subr.bf16.mxu1 %v2485_v60  ;;  %vm1930_vm2 = vcmp.lt.s32.totalorder %v1929_v56, 4 }
 0x576   :  { %2186 = vmatpush3.bf16.msra.mxu0 %v2486_v2  ;;  %2208 = vmatpush3.bf16.msra.mxu1 %v2487_v25 }
 0x577   :  { %2187 = vmatprep.subr.bf16.mxu0 %v2488_v0  ;;  %2209 = vmatprep.subr.bf16.mxu1 %v2489_v62 }
 0x57a   :  { %2188 = vmatpush3.bf16.msra.mxu0 %v2490_v28  ;;  %2210 = vmatpush3.bf16.msra.mxu1 %v2491_v30 }
 0x57b   :  { %2189 = vmatprep.subr.bf16.mxu0 %v2492_v37  ;;  %2211 = vmatprep.subr.bf16.mxu1 %v2493_v6 }
 0x57e   :  { %2190 = vmatpush3.bf16.msra.mxu0 %v2494_v4  ;;  %2212 = vmatpush3.bf16.msra.mxu1 %v2495_v5 }
 0x57f   :  { %2191 = vmatprep.subr.bf16.mxu0 %v2496_v7  ;;  %2213 = vmatprep.subr.bf16.mxu1 %v2497_v10 }
 0x582   :  { %2192 = vmatpush3.bf16.msra.mxu0 %v2498_v13  ;;  %2214 = vmatpush3.bf16.msra.mxu1 %v2499_v1 }
 0x583   :  { %2270 = vmatprep.subr.bf16.mxu0 %v3416_v61 }
 0x585   :  { %1758 = vmatmul.mubr.bf16.vlgmr.msra.gmra.mrb[20].mxu0 %v1189_v8  ;;  %1798 = vmatmul.mubr.bf16.vlgmr.msra.gmra.mrb[20].mxu1 %v1191_v9 }
 0x586   :  { %2286 = vmatprep.mubr.msk.bf16.mxu0 %vm2666_vm0, %v3416_v61  ;;  %2271 = vmatpush3.bf16.msra.mxu0 %v2500_v14 }
 0x587   :  { %2272 = vmatprep.subr.bf16.mxu0 %v3416_v61 }
 0x58a   :  { %2273 = vmatpush3.bf16.msra.mxu0 %v2501_v15 }
 0x58b   :  { %2274 = vmatprep.subr.bf16.mxu0 %v3416_v61 }
 0x58e   :  { %2275 = vmatpush3.bf16.msra.mxu0 %v2502_v24 }
 0x58f   :  { %2276 = vmatprep.subr.bf16.mxu0 %v3416_v61 }
 0x592   :  { %2277 = vmatpush3.bf16.msra.mxu0 %v2503_v16 }
 0x593   :  { %2278 = vmatprep.subr.bf16.mxu0 %v3416_v61 }
 0x596   :  { %2279 = vmatpush3.bf16.msra.mxu0 %v2504_v31 }
 0x597   :  { %2280 = vmatprep.subr.bf16.mxu0 %v3416_v61 }
 0x59a   :  { %2281 = vmatpush3.bf16.msra.mxu0 %v2505_v17 }
 0x59b   :  { %2282 = vmatprep.subr.bf16.mxu0 %v3416_v61 }
 0x59e   :  { %2283 = vmatpush3.bf16.msra.mxu0 %v2506_v26 }
 0x59f   :  { %2284 = vmatprep.subr.bf16.mxu0 %v3416_v61 }
 0x5a2   :  { %2285 = vmatpush3.bf16.msra.mxu0 %v2507_v18 }
 0x638   :  { %v2149_v19 = vpop.f32.mrb[16].mxu0  ;;  %v2171_v20 = vpop.f32.mrb[16].mxu1 }
 0x639   :  { %v2150_v21 = vpop.f32.mrb[17].mxu0  ;;  %v2172_v32 = vpop.f32.mrb[17].mxu1 }
 0x63a   :  { %v2151_v33 = vadd.f32 %v2150_v21, %v2149_v19  ;;  %v2173_v34 = vadd.f32 %v2172_v32, %v2171_v20  ;;  %v2152_v35 = vpop.f32.mrb[18].mxu0  ;;  %v2174_v36 = vpop.f32.mrb[18].mxu1 }
 0x63b   :  { %v2153_v38 = vpop.f32.mrb[19].mxu0  ;;  %v2175_v39 = vpop.f32.mrb[19].mxu1 }
 0x63c   :  { %v1528_v27 = vadd.f32 %v2173_v34, %v2151_v33 }
 0x658   :  { %v2193_v29 = vpop.f32.mrb[20].mxu0  ;;  %v2215_v40 = vpop.f32.mrb[20].mxu1 }
 0x659   :  { %v2194_v41 = vpop.f32.mrb[21].mxu0  ;;  %v2216_v42 = vpop.f32.mrb[21].mxu1 }
 0x65a   :  { %v2195_v43 = vadd.f32 %v2194_v41, %v2193_v29  ;;  %v2217_v44 = vadd.f32 %v2216_v42, %v2215_v40  ;;  %v2196_v61 = vpop.f32.mrb[22].mxu0  ;;  %v2218_v45 = vpop.f32.mrb[22].mxu1 }
 0x65b   :  { %v2197_v46 = vpop.f32.mrb[23].mxu0  ;;  %v2219_v47 = vpop.f32.mrb[23].mxu1 }
 0x65c   :  { %v1760_v48 = vadd.f32 %v2195_v43, %v1528_v27 }
 0x65e   :  { %v1800_v50 = vadd.f32 %v2217_v44, %v1760_v48 }
 0x660   :  { %v1812_v51 = vadd.f32 %v2105_v49, %v1800_v50 }
 0x662   :  { %vm1813_vm0 = vcmp.ge.f32.partialorder %v1812_v51, 0.0  ;;  %v1814_v52 = vmul.f32 0.01, %v1812_v51 }
 0x664   :  { %v1815_v53 = vsel %vm1813_vm0, %v1812_v51, %v1814_v52 }
 0x665   :  { %v1832_v54 = vpack.c.bf16 %v1815_v53, %v1815_v53 }
 0x667   :  { %2287 = vmatmul.mubr.bf16.vlgmr.msra.gmra.mrb[24].mxu0 %v1832_v54 }
 0x73a   :  { %v1922_v58 = vpop.f32.mrb[24].mxu0 }
 0x73b   :  { %v1923_v59 = vadd.f32 %v2106_v57, %v1922_v58  ;;  %v2288_v60 = vpop.f32.mrb[25].mxu0 }
 0x73c   :  { %v1925_v2 = vpop.f32.mrb[26].mxu0 }
 0x73d   :  { %v2289_v25 = vpop.f32.mrb[27].mxu0  ;;  %v1931_v0 = vsel %vm1930_vm2, %v1923_v59, -1e+30 }
 0x73e   :  { %1932 = vmax.xlane.f32.xlu1 %v1931_v0 }
 0x7cb   :  { %v1933_v62 = vpop.xlane.xlu1 %1932 }
 0x7cc   :  { %v1934_v28 = vsub.f32 %v1931_v0, %v1933_v62 }
 0x7ce   :  { %v1935_v30 = vmul.f32 1.442695, %v1934_v28 }
 0x7d0   :  { %2508 = vpow2.f32 %v1935_v30 }
 0x7da   :  { %v2509_v37 = vpop.eup %2508 }
 0x7db   :  { %1937 = vadd.xlane.f32.xlu1 %v2509_v37 }
 0x868   :  { %v1938_v6 = vpop.xlane.xlu1 %1937 }
 0x869   :  { %2510 = vrcp.f32 %v1938_v6 }
 0x873   :  { %v2511_v63 = vpop.eup %2510 }
 0x874   :  { %v1940_v3 = vmul.f32 %v2511_v63, %v2509_v37 }
 0x876   :  { %1941 = vst [vmem:[%s3322_s14] sm:$0xff] %v1940_v3 }
 0x877   :  { %1946 = vsyncpa [#allocation3], 1 }
 0x878   :  { %1947 = vsyncpa [#allocation5], 1 }
 0x879   :  { %1948 = vsyncpa [#allocation8], 1 }
 0x87a   :  { %1949 = vsyncpa [#allocation11], 1 }

</bundles_post_ra>
